<compile_context>
chip_gen: v6e
topology: v6e:2x2x1
jax: 0.10.0
libtpu: 0.0.40
codegen_flags: <defaults>
</compile_context>

<pallas_src>
import math
import functools
import numpy as np

import jax
import jax.numpy as jnp
from jax.experimental import pallas as pl
from jax.experimental.pallas import tpu as pltpu

EPS = 1e-6                      # NormLayer eps (added to the unbiased std)
MASK_VALUE = -1e30              # large finite negative instead of -inf


def _vmem_limit_bytes():
    """3/4 of physical VMEM, capped at 112 MiB; safe fallback of 48 MiB."""
    try:
        cap = pltpu.get_tpu_info().vmem_capacity_bytes
        return int(min(cap * 3 // 4, 112 * 1024 * 1024))
    except Exception:
        return 48 * 1024 * 1024


VMEM_LIMIT = _vmem_limit_bytes()


# ----------------------------------------------------------------------------
# helpers
# ----------------------------------------------------------------------------
def _compiler_params(*sem):
    return pltpu.CompilerParams(dimension_semantics=sem,
                                vmem_limit_bytes=VMEM_LIMIT)


def _row_tile(n, pref=512):
    """Largest multiple-of-8 tile <= pref dividing n; prefer >= 2 grid steps."""
    cands = [t for t in range(8, min(pref, n) + 1, 8) if n % t == 0]
    if not cands:
        return n
    two = [t for t in cands if n // t >= 2]
    return max(two) if two else max(cands)


def _col_tile(n, pref=1024):
    """Largest multiple-of-128 tile <= pref dividing n; prefer >= 2 grid steps.

    Callers must ensure n is a multiple of 128 (LM-head vocab is padded)."""
    cands = [t for t in range(128, min(pref, n) + 1, 128) if n % t == 0]
    if not cands:
        return n
    two = [t for t in cands if n // t >= 2]
    return max(two) if two else max(cands)


def _layernorm(x, alpha, beta):
    """torch NormLayer: alpha*(x-mean)/(unbiased_std + eps) + beta (f32 stats)."""
    e = x.shape[-1]
    mean = jnp.mean(x, axis=-1, keepdims=True)
    d = x - mean
    var = jnp.sum(d * d, axis=-1, keepdims=True) * (1.0 / (e - 1))
    return alpha * d / (jnp.sqrt(var) + EPS) + beta


# ----------------------------------------------------------------------------
# fused attention-block kernel (per-batch grid point):
#   ln1 -> fused QKV -> batched per-head masked softmax (H as batch dim) ->
#   fused (out-proj @ extra-linear) -> residual add
# ----------------------------------------------------------------------------
def _attn_block_kernel(
    x_ref, kpm_ref,
    ln_a_ref, ln_b_ref,
    wqkv_ref, bqkv_ref, wol_ref, bol_ref,
    o_ref, *, num_heads,
):
    x = x_ref[0]                                   # (S, E) f32 residual input
    S, E = x.shape
    dh = E // num_heads

    h = _layernorm(x, ln_a_ref[...], ln_b_ref[...])

    # one (S,E)@(E,3E) bf16 MXU matmul; the 1/sqrt(dh) scale is already folded
    # into the Q third of wqkv/bqkv at pack time.
    qkv = jnp.dot(h.astype(jnp.bfloat16), wqkv_ref[...],
                  preferred_element_type=jnp.float32) + bqkv_ref[...]
    q = qkv[:, :E]
    k = qkv[:, E:2 * E]
    v = qkv[:, 2 * E:]

    # causal mask built in-kernel (no (S,S) HBM traffic) + key-padding row
    rows = jax.lax.broadcasted_iota(jnp.int32, (S, S), 0)
    cols = jax.lax.broadcasted_iota(jnp.int32, (S, S), 1)
    mask = jnp.where(cols > rows, MASK_VALUE, 0.0) + kpm_ref[0]      # (S, S)

    # batched per-head attention: H is a batch dim of both contractions
    qh = q.reshape(S, num_heads, dh).transpose(1, 0, 2).astype(jnp.bfloat16)
    kh = k.reshape(S, num_heads, dh).transpose(1, 0, 2).astype(jnp.bfloat16)
    vh = v.reshape(S, num_heads, dh).transpose(1, 0, 2).astype(jnp.bfloat16)

    s = jnp.einsum('hqd,hkd->hqk', qh, kh,
                   preferred_element_type=jnp.float32)               # (H,S,S)
    s = s + mask[None]
    m = jnp.max(s, axis=-1, keepdims=True)
    p = jnp.exp(s - m)                                               # f32
    row_sum = jnp.sum(p, axis=-1, keepdims=True)                     # (H,S,1)
    o = jnp.einsum('hqk,hkd->hqd', p.astype(jnp.bfloat16), vh,
                   preferred_element_type=jnp.float32)               # (H,S,dh)
    # deferred softmax normalization: scale the (H,S,dh) output, not (H,S,S) P
    o = o * pl.reciprocal(row_sum, approx=True)
    attn = o.transpose(1, 0, 2).reshape(S, E)                        # (S, E)

    # single fused out-proj + extra linear (W = Wo@Wl, b = bo@Wl + bl), then
    # residual add — output written once, lane-dense.
    y = jnp.dot(attn.astype(jnp.bfloat16), wol_ref[...],
                preferred_element_type=jnp.float32) + bol_ref[...]
    o_ref[0] = x + y


def attention_block(x, kpm_add, blk, num_heads):
    B, S, E = x.shape
    kern = functools.partial(_attn_block_kernel, num_heads=num_heads)
    return pl.pallas_call(
        kern,
        out_shape=jax.ShapeDtypeStruct((B, S, E), jnp.float32),
        grid=(B,),
        in_specs=[
            pl.BlockSpec((1, S, E), lambda b: (b, 0, 0)),
            pl.BlockSpec((1, 1, S), lambda b: (b, 0, 0)),
            pl.BlockSpec((1, E), lambda b: (0, 0)),
            pl.BlockSpec((1, E), lambda b: (0, 0)),
            pl.BlockSpec((E, 3 * E), lambda b: (0, 0)),
            pl.BlockSpec((1, 3 * E), lambda b: (0, 0)),
            pl.BlockSpec((E, E), lambda b: (0, 0)),
            pl.BlockSpec((1, E), lambda b: (0, 0)),
        ],
        out_specs=pl.BlockSpec((1, S, E), lambda b: (b, 0, 0)),
        compiler_params=_compiler_params("parallel"),
    )(x, kpm_add, blk["ln1_a"], blk["ln1_b"],
      blk["w_qkv"], blk["b_qkv"], blk["w_ol"], blk["b_ol"])


# ----------------------------------------------------------------------------
# fused FFN-block kernel (row-tiled):  ln2 -> linear -> ReLU -> linear -> +res
# ----------------------------------------------------------------------------
def _ffn_block_kernel(x_ref, ln_a_ref, ln_b_ref,
                      w1_ref, b1_ref, w2_ref, b2_ref, o_ref):
    x = x_ref[...]                                 # (tm, E) f32 residual input
    h = _layernorm(x, ln_a_ref[...], ln_b_ref[...])
    h1 = jnp.dot(h.astype(jnp.bfloat16), w1_ref[...],
                 preferred_element_type=jnp.float32) + b1_ref[...]
    h1 = jnp.maximum(h1, 0.0)
    y = jnp.dot(h1.astype(jnp.bfloat16), w2_ref[...],
                preferred_element_type=jnp.float32) + b2_ref[...]
    o_ref[...] = x + y


def ffn_block(x, blk, tm_pref=512):
    B, S, E = x.shape
    N = B * S
    I = blk["w1"].shape[1]
    tm = _row_tile(N, tm_pref)
    x2 = x.reshape(N, E)
    y = pl.pallas_call(
        _ffn_block_kernel,
        out_shape=jax.ShapeDtypeStruct((N, E), jnp.float32),
        grid=(N // tm,),
        in_specs=[
            pl.BlockSpec((tm, E), lambda i: (i, 0)),
            pl.BlockSpec((1, E), lambda i: (0, 0)),
            pl.BlockSpec((1, E), lambda i: (0, 0)),
            pl.BlockSpec((E, I), lambda i: (0, 0)),
            pl.BlockSpec((1, I), lambda i: (0, 0)),
            pl.BlockSpec((I, E), lambda i: (0, 0)),
            pl.BlockSpec((1, E), lambda i: (0, 0)),
        ],
        out_specs=pl.BlockSpec((tm, E), lambda i: (i, 0)),
        compiler_params=_compiler_params("parallel"),
    )(x2, blk["ln2_a"], blk["ln2_b"], blk["w1"], blk["b1"],
      blk["w2"], blk["b2"])
    return y.reshape(B, S, E)


# ----------------------------------------------------------------------------
# fused LM-head kernel (tiled over rows x padded vocab):  final ln -> x @ W + b
# ----------------------------------------------------------------------------
def _lm_head_kernel(x_ref, ln_a_ref, ln_b_ref, w_ref, b_ref, o_ref):
    h = _layernorm(x_ref[...], ln_a_ref[...], ln_b_ref[...])
    o_ref[...] = jnp.dot(h.astype(jnp.bfloat16), w_ref[...],
                         preferred_element_type=jnp.float32) + b_ref[...]


def lm_head(x, params, tm_pref=512, tn_pref=1024):
    B, S, E = x.shape
    N = B * S
    V = params["vocab"]
    Vp = params["lm_w"].shape[1]                    # padded to multiple of 128
    tm = _row_tile(N, tm_pref)
    tn = _col_tile(Vp, tn_pref)
    x2 = x.reshape(N, E)
    logits = pl.pallas_call(
        _lm_head_kernel,
        out_shape=jax.ShapeDtypeStruct((N, Vp), jnp.float32),
        grid=(N // tm, Vp // tn),
        in_specs=[
            pl.BlockSpec((tm, E), lambda i, j: (i, 0)),
            pl.BlockSpec((1, E), lambda i, j: (0, 0)),
            pl.BlockSpec((1, E), lambda i, j: (0, 0)),
            pl.BlockSpec((E, tn), lambda i, j: (0, j)),
            pl.BlockSpec((1, tn), lambda i, j: (0, j)),
        ],
        out_specs=pl.BlockSpec((tm, tn), lambda i, j: (i, j)),
        compiler_params=_compiler_params("parallel", "parallel"),
    )(x2, params["ln_a"], params["ln_b"], params["lm_w"], params["lm_b"])
    return logits[:, :V].reshape(B, S, V)


# ----------------------------------------------------------------------------
# positional embedding table (exact formula from the PyTorch module)
# ----------------------------------------------------------------------------
def make_pe(max_len, E):
    pos = np.arange(max_len, dtype=np.float64)[:, None]
    idx = np.arange(E, dtype=np.float64)[None, :]
    angle = pos / (10000.0 ** (2.0 * idx / E))
    pe = np.where(idx.astype(np.int64) % 2 == 0, np.sin(angle), np.cos(angle))
    return jnp.asarray(pe, dtype=jnp.float32)


# ----------------------------------------------------------------------------
# parameter init (deterministic, synthetic, f32 "raw" parameters)
# ----------------------------------------------------------------------------
def init_params(key, vocab, E, heads, n_blocks, max_seq_len, inter=2048):
    keys = iter(jax.random.split(key, 128))

    def nrm(shape, scale=0.02):
        return (scale * jax.random.normal(next(keys), shape)).astype(jnp.float32)

    params = {
        "num_head": heads,
        "wte": nrm((vocab, E)),
        "pe": make_pe(max_seq_len, E),
        "ln_a": jnp.ones((1, E), jnp.float32),
        "ln_b": jnp.zeros((1, E), jnp.float32),
        "lm_w": nrm((E, vocab)),
        "lm_b": nrm((1, vocab)),
        "blocks": [],
    }
    for _ in range(n_blocks):
        blk = {
            "ln1_a": jnp.ones((1, E), jnp.float32),
            "ln1_b": jnp.zeros((1, E), jnp.float32),
            "ln2_a": jnp.ones((1, E), jnp.float32),
            "ln2_b": jnp.zeros((1, E), jnp.float32),
            "attn": (
                nrm((E, E)), nrm((E, E)), nrm((E, E)),       # Wq, Wk, Wv
                nrm((1, E)), nrm((1, E)), nrm((1, E)),       # bq, bk, bv
                nrm((E, E)), nrm((1, E)),                    # out-proj
                nrm((E, E)), nrm((1, E)),                    # extra linear
            ),
            "w1": nrm((E, inter)), "b1": nrm((1, inter)),
            "w2": nrm((inter, E)), "b2": nrm((1, E)),
        }
        params["blocks"].append(blk)
    return params


# ----------------------------------------------------------------------------
# pack raw params into kernel-ready form:
#   fused QKV with the 1/sqrt(dh) scale folded into Q, fused (Wo@Wl),
#   bf16 weights, vocab padded to a multiple of 128.
# ----------------------------------------------------------------------------
def pack_params(raw):
    E = raw["wte"].shape[1]
    H = raw["num_head"]
    dh = E // H
    scale = 1.0 / math.sqrt(dh)

    V = raw["lm_w"].shape[1]
    Vp = ((V + 127) // 128) * 128
    lm_w, lm_b = raw["lm_w"], raw["lm_b"]
    if Vp != V:
        lm_w = jnp.pad(lm_w, ((0, 0), (0, Vp - V)))
        lm_b = jnp.pad(lm_b, ((0, 0), (0, Vp - V)))

    packed = {
        "num_head": H,
        "vocab": V,
        "wte": raw["wte"],
        "pe": raw["pe"],
        "ln_a": raw["ln_a"], "ln_b": raw["ln_b"],
        "lm_w": lm_w.astype(jnp.bfloat16),
        "lm_b": lm_b,
        "blocks": [],
    }
    for blk in raw["blocks"]:
        wq, wk, wv, bq, bk, bv, wo, bo, wl, bl = blk["attn"]
        packed["blocks"].append({
            "ln1_a": blk["ln1_a"], "ln1_b": blk["ln1_b"],
            "ln2_a": blk["ln2_a"], "ln2_b": blk["ln2_b"],
            # fold softmax scale into the Q third
            "w_qkv": jnp.concatenate([wq * scale, wk, wv], axis=1).astype(jnp.bfloat16),
            "b_qkv": jnp.concatenate([bq * scale, bk, bv], axis=1),
            "w_ol": jnp.dot(wo, wl).astype(jnp.bfloat16),       # Wo @ Wl fused
            "b_ol": jnp.dot(bo, wl) + bl,
            "w1": blk["w1"].astype(jnp.bfloat16), "b1": blk["b1"],
            "w2": blk["w2"].astype(jnp.bfloat16), "b2": blk["b2"],
        })
    return packed


# ----------------------------------------------------------------------------
# full GPT2 forward using the Pallas kernels (causal tgt_mask built in-kernel)
# ----------------------------------------------------------------------------
def gpt2_forward(packed, tokens, key_padding_mask):
    B, S = tokens.shape
    E = packed["wte"].shape[1]
    H = packed["num_head"]

    x = jnp.take(packed["wte"], tokens, axis=0)              # (B, S, E)
    x = x * math.sqrt(E) + packed["pe"][:S][None]            # positional embed
    # dropout -> identity (eval)

    kpm_add = jnp.where(key_padding_mask, MASK_VALUE, 0.0).astype(jnp.float32)
    kpm_add = kpm_add.reshape(B, 1, S)                       # (B, 1, S)

    for blk in packed["blocks"]:
        x = attention_block(x, kpm_add, blk, H)              # ln1+attn+residual
        x = ffn_block(x, blk)                                # ln2+ffn+residual

    return lm_head(x, packed)                                # final ln + linear


# ----------------------------------------------------------------------------
# pure-JAX reference (unfused, f32 HIGHEST precision) for correctness check
# ----------------------------------------------------------------------------
def ref_forward(params, tokens, tgt_mask, key_padding_mask):
    hp = jax.lax.Precision.HIGHEST
    B, S = tokens.shape
    E = params["wte"].shape[1]
    H = params["num_head"]
    dh = E // H

    def mm(a, b):
        return jnp.matmul(a, b, precision=hp)

    def norm(x, a, b):
        mean = x.mean(-1, keepdims=True)
        d = x - mean
        std = jnp.sqrt((d * d).sum(-1, keepdims=True) / (x.shape[-1] - 1))
        return a * d / (std + EPS) + b

    x = jnp.take(params["wte"], tokens, axis=0) * math.sqrt(E) + params["pe"][:S][None]
    kpm_add = jnp.where(key_padding_mask, MASK_VALUE, 0.0).astype(jnp.float32)
    mask = tgt_mask[None] + kpm_add[:, None, :]                 # (B, S, S)

    for blk in params["blocks"]:
        h = norm(x, blk["ln1_a"], blk["ln1_b"])
        wq, wk, wv, bq, bk, bv, wo, bo, wl, bl = blk["attn"]
        q = mm(h, wq) + bq
        k = mm(h, wk) + bk
        v = mm(h, wv) + bv
        qh = q.reshape(B, S, H, dh).transpose(0, 2, 1, 3)
        kh = k.reshape(B, S, H, dh).transpose(0, 2, 1, 3)
        vh = v.reshape(B, S, H, dh).transpose(0, 2, 1, 3)
        s = jnp.einsum("bhqd,bhkd->bhqk", qh, kh, precision=hp) / math.sqrt(dh)
        s = s + mask[:, None]
        p = jax.nn.softmax(s, axis=-1)
        o = jnp.einsum("bhqk,bhkd->bhqd", p, vh, precision=hp)
        o = o.transpose(0, 2, 1, 3).reshape(B, S, E)
        o = mm(o, wo) + bo
        o = mm(o, wl) + bl
        x = x + o
        h = norm(x, blk["ln2_a"], blk["ln2_b"])
        f = mm(jnp.maximum(mm(h, blk["w1"]) + blk["b1"], 0.0), blk["w2"]) + blk["b2"]
        x = x + f

    x = norm(x, params["ln_a"], params["ln_b"])
    return mm(x, params["lm_w"]) + params["lm_b"]


# ----------------------------------------------------------------------------
if __name__ == "__main__":
    B, S = 2, 16
    VOCAB, E, HEADS, N_BLOCKS = 256, 128, 4, 3

    key = jax.random.PRNGKey(0)
    k_params, k_tok = jax.random.split(key)

    raw_params = init_params(k_params, VOCAB, E, HEADS, N_BLOCKS, max_seq_len=64)
    packed_params = pack_params(raw_params)
    tokens = jax.random.randint(k_tok, (B, S), 0, VOCAB, dtype=jnp.int32)

    # key padding mask (B, S): True = ignore; pad last two positions of batch 1
    kpm = jnp.zeros((B, S), dtype=bool).at[1, S - 2:].set(True)

    logits = gpt2_forward(packed_params, tokens, kpm)
    jax.block_until_ready(logits)

    # causal attn_mask for the reference (the kernel builds it in-kernel)
    rows = jnp.arange(S)[:, None]
    cols = jnp.arange(S)[None, :]
    tgt_mask = jnp.where(cols > rows, MASK_VALUE, 0.0).astype(jnp.float32)

    ref = ref_forward(raw_params, tokens, tgt_mask, kpm)
    np.testing.assert_allclose(
        np.asarray(logits), np.asarray(ref.reshape(B, S, VOCAB)),
        rtol=3e-2, atol=3e-2,
    )

    print("KERNEL_OK")
</pallas_src>

<mosaic_0001>
module attributes {stable_mosaic.version = 11 : i64} {
  func.func @_attn_block_kernel(%arg0: i32, %arg1: memref<1x16x128xf32, #tpu.memory_space<vmem>>, %arg2: memref<1x1x16xf32, #tpu.memory_space<vmem>>, %arg3: memref<1x128xf32, #tpu.memory_space<vmem>>, %arg4: memref<1x128xf32, #tpu.memory_space<vmem>>, %arg5: memref<128x384xbf16, #tpu.memory_space<vmem>>, %arg6: memref<1x384xf32, #tpu.memory_space<vmem>>, %arg7: memref<128x128xbf16, #tpu.memory_space<vmem>>, %arg8: memref<1x128xf32, #tpu.memory_space<vmem>>, %arg9: memref<1x16x128xf32, #tpu.memory_space<vmem>>) attributes {dimension_semantics = [#tpu.dimension_semantics<parallel>], iteration_bounds = array<i64: 2>, scalar_prefetch = 0 : i64, scratch_operands = 0 : i64, tpu.core_type = #tpu.core_type<tc>, window_params = [{transform_indices = @transform_0, window_bounds = array<i64: 1, 16, 128>}, {transform_indices = @transform_1, window_bounds = array<i64: 1, 1, 16>}, {pipeline_mode = #tpu.pipeline_mode<synchronous>, transform_indices = @transform_2, window_bounds = array<i64: 1, 128>}, {pipeline_mode = #tpu.pipeline_mode<synchronous>, transform_indices = @transform_3, window_bounds = array<i64: 1, 128>}, {pipeline_mode = #tpu.pipeline_mode<synchronous>, transform_indices = @transform_4, window_bounds = array<i64: 128, 384>}, {pipeline_mode = #tpu.pipeline_mode<synchronous>, transform_indices = @transform_5, window_bounds = array<i64: 1, 384>}, {pipeline_mode = #tpu.pipeline_mode<synchronous>, transform_indices = @transform_6, window_bounds = array<i64: 128, 128>}, {pipeline_mode = #tpu.pipeline_mode<synchronous>, transform_indices = @transform_7, window_bounds = array<i64: 1, 128>}, {transform_indices = @transform_8, window_bounds = array<i64: 1, 16, 128>}]} {
    %c0 = arith.constant 0 : index
    %c0_0 = arith.constant 0 : index
    %c0_1 = arith.constant 0 : index
    %0 = vector.load %arg1[%c0, %c0_0, %c0_1] : memref<1x16x128xf32, #tpu.memory_space<vmem>>, vector<1x16x128xf32>
    %1 = vector.shape_cast %0 : vector<1x16x128xf32> to vector<16x128xf32>
    %c0_2 = arith.constant 0 : index
    %c0_3 = arith.constant 0 : index
    %2 = vector.load %arg3[%c0_2, %c0_3] : memref<1x128xf32, #tpu.memory_space<vmem>>, vector<1x128xf32>
    %c0_4 = arith.constant 0 : index
    %c0_5 = arith.constant 0 : index
    %3 = vector.load %arg4[%c0_4, %c0_5] : memref<1x128xf32, #tpu.memory_space<vmem>>, vector<1x128xf32>
    %cst = arith.constant dense<0.000000e+00> : vector<16xf32>
    %4 = vector.multi_reduction <add>, %1, %cst [1] : vector<16x128xf32> to vector<16xf32>
    %5 = vector.shape_cast %4 : vector<16xf32> to vector<16x1xf32>
    %cst_6 = arith.constant 1.280000e+02 : f32
    %6 = vector.broadcast %cst_6 : f32 to vector<16x1xf32>
    %7 = arith.divf %5, %6 : vector<16x1xf32>
    %8 = vector.broadcast %7 : vector<16x1xf32> to vector<16x128xf32>
    %9 = arith.subf %1, %8 : vector<16x128xf32>
    %10 = arith.mulf %9, %9 : vector<16x128xf32>
    %cst_7 = arith.constant dense<0.000000e+00> : vector<16xf32>
    %11 = vector.multi_reduction <add>, %10, %cst_7 [1] : vector<16x128xf32> to vector<16xf32>
    %12 = vector.shape_cast %11 : vector<16xf32> to vector<16x1xf32>
    %cst_8 = arith.constant 0.00787401571 : f32
    %13 = vector.broadcast %cst_8 : f32 to vector<16x1xf32>
    %14 = arith.mulf %12, %13 : vector<16x1xf32>
    %15 = vector.broadcast %2 : vector<1x128xf32> to vector<16x128xf32>
    %16 = arith.mulf %15, %9 : vector<16x128xf32>
    %17 = math.sqrt %14 : vector<16x1xf32>
    %cst_9 = arith.constant 9.99999997E-7 : f32
    %18 = vector.broadcast %cst_9 : f32 to vector<16x1xf32>
    %19 = arith.addf %17, %18 : vector<16x1xf32>
    %20 = vector.broadcast %19 : vector<16x1xf32> to vector<16x128xf32>
    %21 = arith.divf %16, %20 : vector<16x128xf32>
    %22 = vector.broadcast %3 : vector<1x128xf32> to vector<16x128xf32>
    %23 = arith.addf %21, %22 : vector<16x128xf32>
    %24 = arith.truncf %23 : vector<16x128xf32> to vector<16x128xbf16>
    %c0_10 = arith.constant 0 : index
    %c0_11 = arith.constant 0 : index
    %25 = vector.load %arg5[%c0_10, %c0_11] : memref<128x384xbf16, #tpu.memory_space<vmem>>, vector<128x384xbf16>
    %cst_12 = arith.constant dense<0.000000e+00> : vector<16x384xf32>
    %26 = tpu.matmul %24, %25, %cst_12 {dimension_numbers = #tpu.dot_dimension_numbers<[1], [0], [0], [1], [0, 0, 1, 1], [], []>} : vector<16x128xbf16>, vector<128x384xbf16>, vector<16x384xf32> -> vector<16x384xf32>
    %c0_13 = arith.constant 0 : index
    %c0_14 = arith.constant 0 : index
    %27 = vector.load %arg6[%c0_13, %c0_14] : memref<1x384xf32, #tpu.memory_space<vmem>>, vector<1x384xf32>
    %28 = vector.broadcast %27 : vector<1x384xf32> to vector<16x384xf32>
    %29 = arith.addf %26, %28 : vector<16x384xf32>
    %30 = vector.extract_strided_slice %29 {offsets = [0, 0], sizes = [16, 128], strides = [1, 1]} : vector<16x384xf32> to vector<16x128xf32>
    %31 = vector.extract_strided_slice %29 {offsets = [0, 128], sizes = [16, 128], strides = [1, 1]} : vector<16x384xf32> to vector<16x128xf32>
    %32 = vector.extract_strided_slice %29 {offsets = [0, 256], sizes = [16, 128], strides = [1, 1]} : vector<16x384xf32> to vector<16x128xf32>
    %33 = tpu.iota {dimensions = array<i32: 0>} : vector<16x16xi32>
    %34 = tpu.iota {dimensions = array<i32: 1>} : vector<16x16xi32>
    %35 = arith.cmpi sgt, %34, %33 : vector<16x16xi32>
    %cst_15 = arith.constant -1.000000e+30 : f32
    %cst_16 = arith.constant 0.000000e+00 : f32
    %36 = vector.broadcast %cst_15 : f32 to vector<16x16xf32>
    %37 = vector.broadcast %cst_16 : f32 to vector<16x16xf32>
    %38 = arith.select %35, %36, %37 : vector<16x16xi1>, vector<16x16xf32>
    %c0_17 = arith.constant 0 : index
    %c0_18 = arith.constant 0 : index
    %c0_19 = arith.constant 0 : index
    %39 = vector.load %arg2[%c0_17, %c0_18, %c0_19] : memref<1x1x16xf32, #tpu.memory_space<vmem>>, vector<1x1x16xf32>
    %40 = vector.shape_cast %39 : vector<1x1x16xf32> to vector<1x16xf32>
    %41 = vector.broadcast %40 : vector<1x16xf32> to vector<16x16xf32>
    %42 = arith.addf %38, %41 : vector<16x16xf32>
    %43 = vector.shape_cast %30 : vector<16x128xf32> to vector<16x4x32xf32>
    %44 = tpu.transpose %43, [1, 0, 2] : vector<16x4x32xf32> -> vector<4x16x32xf32>
    %45 = arith.truncf %44 : vector<4x16x32xf32> to vector<4x16x32xbf16>
    %46 = vector.shape_cast %31 : vector<16x128xf32> to vector<16x4x32xf32>
    %47 = tpu.transpose %46, [1, 0, 2] : vector<16x4x32xf32> -> vector<4x16x32xf32>
    %48 = arith.truncf %47 : vector<4x16x32xf32> to vector<4x16x32xbf16>
    %49 = vector.shape_cast %32 : vector<16x128xf32> to vector<16x4x32xf32>
    %50 = tpu.transpose %49, [1, 0, 2] : vector<16x4x32xf32> -> vector<4x16x32xf32>
    %51 = arith.truncf %50 : vector<4x16x32xf32> to vector<4x16x32xbf16>
    "tpu.trace_start"() <{level = 10 : i32, message = "hqd,hkd->hqk"}> : () -> ()
    %cst_20 = arith.constant dense<0.000000e+00> : vector<4x16x16xf32>
    %52 = tpu.matmul %45, %48, %cst_20 {dimension_numbers = #tpu.dot_dimension_numbers<[2], [2], [1], [1], [0, 0, 0, 1, 1, 1], [0], [0]>} : vector<4x16x32xbf16>, vector<4x16x32xbf16>, vector<4x16x16xf32> -> vector<4x16x16xf32>
    "tpu.trace_stop"() : () -> ()
    %53 = vector.shape_cast %42 : vector<16x16xf32> to vector<1x16x16xf32>
    %54 = vector.broadcast %53 : vector<1x16x16xf32> to vector<4x16x16xf32>
    %55 = arith.addf %52, %54 : vector<4x16x16xf32>
    %cst_21 = arith.constant dense<0xFF800000> : vector<4x16xf32>
    %56 = vector.multi_reduction <maximumf>, %55, %cst_21 [2] : vector<4x16x16xf32> to vector<4x16xf32>
    %57 = vector.shape_cast %56 : vector<4x16xf32> to vector<4x16x1xf32>
    %58 = vector.broadcast %57 : vector<4x16x1xf32> to vector<4x16x16xf32>
    %59 = arith.subf %55, %58 : vector<4x16x16xf32>
    %60 = math.exp %59 : vector<4x16x16xf32>
    %cst_22 = arith.constant dense<0.000000e+00> : vector<4x16xf32>
    %61 = vector.multi_reduction <add>, %60, %cst_22 [2] : vector<4x16x16xf32> to vector<4x16xf32>
    %62 = vector.shape_cast %61 : vector<4x16xf32> to vector<4x16x1xf32>
    %63 = arith.truncf %60 : vector<4x16x16xf32> to vector<4x16x16xbf16>
    "tpu.trace_start"() <{level = 10 : i32, message = "hqk,hkd->hqd"}> : () -> ()
    %cst_23 = arith.constant dense<0.000000e+00> : vector<4x16x32xf32>
    %64 = tpu.matmul %63, %51, %cst_23 {dimension_numbers = #tpu.dot_dimension_numbers<[2], [1], [1], [2], [0, 0, 0, 1, 1, 2], [0], [0]>} : vector<4x16x16xbf16>, vector<4x16x32xbf16>, vector<4x16x32xf32> -> vector<4x16x32xf32>
    "tpu.trace_stop"() : () -> ()
    %65 = tpu.reciprocal %62 {approx = true} : vector<4x16x1xf32> -> vector<4x16x1xf32>
    %66 = vector.broadcast %65 : vector<4x16x1xf32> to vector<4x16x32xf32>
    %67 = arith.mulf %64, %66 : vector<4x16x32xf32>
    %68 = tpu.transpose %67, [1, 0, 2] : vector<4x16x32xf32> -> vector<16x4x32xf32>
    %69 = vector.shape_cast %68 : vector<16x4x32xf32> to vector<16x128xf32>
    %70 = arith.truncf %69 : vector<16x128xf32> to vector<16x128xbf16>
    %c0_24 = arith.constant 0 : index
    %c0_25 = arith.constant 0 : index
    %71 = vector.load %arg7[%c0_24, %c0_25] : memref<128x128xbf16, #tpu.memory_space<vmem>>, vector<128x128xbf16>
    %cst_26 = arith.constant dense<0.000000e+00> : vector<16x128xf32>
    %72 = tpu.matmul %70, %71, %cst_26 {dimension_numbers = #tpu.dot_dimension_numbers<[1], [0], [0], [1], [0, 0, 1, 1], [], []>} : vector<16x128xbf16>, vector<128x128xbf16>, vector<16x128xf32> -> vector<16x128xf32>
    %c0_27 = arith.constant 0 : index
    %c0_28 = arith.constant 0 : index
    %73 = vector.load %arg8[%c0_27, %c0_28] : memref<1x128xf32, #tpu.memory_space<vmem>>, vector<1x128xf32>
    %74 = vector.broadcast %73 : vector<1x128xf32> to vector<16x128xf32>
    %75 = arith.addf %72, %74 : vector<16x128xf32>
    %76 = arith.addf %1, %75 : vector<16x128xf32>
    %c0_29 = arith.constant 0 : index
    %c0_30 = arith.constant 0 : index
    %c0_31 = arith.constant 0 : index
    %77 = vector.load %arg9[%c0_29, %c0_30, %c0_31] : memref<1x16x128xf32, #tpu.memory_space<vmem>>, vector<1x16x128xf32>
    %78 = vector.shape_cast %77 : vector<1x16x128xf32> to vector<16x128xf32>
    %79 = vector.shape_cast %76 : vector<16x128xf32> to vector<1x16x128xf32>
    tpu.vector_store %arg9[%c0_29, %c0_30, %c0_31], %79 {strides = array<i32>} : memref<1x16x128xf32, #tpu.memory_space<vmem>>, vector<1x16x128xf32>,
    return
  }
  func.func @transform_0(%arg0: i32) -> (i32, i32, i32) {
    %c0_i32 = arith.constant 0 : i32
    %c0_i32_0 = arith.constant 0 : i32
    %c0_i32_1 = arith.constant 0 : i32
    return %arg0, %c0_i32, %c0_i32_0 : i32, i32, i32
  }
  func.func @transform_1(%arg0: i32) -> (i32, i32, i32) {
    %c0_i32 = arith.constant 0 : i32
    %c0_i32_0 = arith.constant 0 : i32
    %c0_i32_1 = arith.constant 0 : i32
    return %arg0, %c0_i32, %c0_i32_0 : i32, i32, i32
  }
  func.func @transform_2(%arg0: i32) -> (i32, i32) {
    %c0_i32 = arith.constant 0 : i32
    %c0_i32_0 = arith.constant 0 : i32
    %c0_i32_1 = arith.constant 0 : i32
    return %c0_i32, %c0_i32_0 : i32, i32
  }
  func.func @transform_3(%arg0: i32) -> (i32, i32) {
    %c0_i32 = arith.constant 0 : i32
    %c0_i32_0 = arith.constant 0 : i32
    %c0_i32_1 = arith.constant 0 : i32
    return %c0_i32, %c0_i32_0 : i32, i32
  }
  func.func @transform_4(%arg0: i32) -> (i32, i32) {
    %c0_i32 = arith.constant 0 : i32
    %c0_i32_0 = arith.constant 0 : i32
    %c0_i32_1 = arith.constant 0 : i32
    return %c0_i32, %c0_i32_0 : i32, i32
  }
  func.func @transform_5(%arg0: i32) -> (i32, i32) {
    %c0_i32 = arith.constant 0 : i32
    %c0_i32_0 = arith.constant 0 : i32
    %c0_i32_1 = arith.constant 0 : i32
    return %c0_i32, %c0_i32_0 : i32, i32
  }
  func.func @transform_6(%arg0: i32) -> (i32, i32) {
    %c0_i32 = arith.constant 0 : i32
    %c0_i32_0 = arith.constant 0 : i32
    %c0_i32_1 = arith.constant 0 : i32
    return %c0_i32, %c0_i32_0 : i32, i32
  }
  func.func @transform_7(%arg0: i32) -> (i32, i32) {
    %c0_i32 = arith.constant 0 : i32
    %c0_i32_0 = arith.constant 0 : i32
    %c0_i32_1 = arith.constant 0 : i32
    return %c0_i32, %c0_i32_0 : i32, i32
  }
  func.func @transform_8(%arg0: i32) -> (i32, i32, i32) {
    %c0_i32 = arith.constant 0 : i32
    %c0_i32_0 = arith.constant 0 : i32
    %c0_i32_1 = arith.constant 0 : i32
    return %arg0, %c0_i32, %c0_i32_0 : i32, i32, i32
  }
}

</mosaic_0001>

<bundles_post_ra>
// kernel: tpu_custom_call.1
= control target key start
LH: loop header
LB: loop body
LE: loop exit
PB: predicated region body
PF: predicated region fallthrough
CT: control target
= control target key end

     0   :  { %s3868_s0 = inlined_call_operand.hbm [shape: f32[2,16,128], index: 0, kind: input, shape index: {}]   ;;  %s3869_s1 = inlined_call_operand.hbm [shape: f32[2,1,16], index: 1, kind: input, shape index: {}]   ;;  %s3870_s2 = inlined_call_operand.vmem [shape: f32[1,128], index: 2, kind: input, shape index: {}]   ;;  %s3871_s3 = inlined_call_operand.vmem [shape: f32[1,128], index: 3, kind: input, shape index: {}]   ;;  %s3872_s4 = inlined_call_operand.hbm [shape: bf16[128,384], index: 4, kind: input, shape index: {}]   ;;  %s3873_s5 = inlined_call_operand.vmem [shape: f32[1,384], index: 5, kind: input, shape index: {}]   ;;  %s3874_s6 = inlined_call_operand.hbm [shape: bf16[128,128], index: 6, kind: input, shape index: {}]   ;;  %s3875_s7 = inlined_call_operand.vmem [shape: f32[1,128], index: 7, kind: input, shape index: {}]   ;;  %s3876_s8 = inlined_call_operand.hbm [shape: f32[2,16,128], index: 8, kind: output, shape index: {}]  }
   0x1   :  { %3885 = sst [smem:[#allocation20_spill]] %s3868_s0 }
   0x2   :  { %3886 = sst [smem:[#allocation21_spill]] %s3872_s4 }
   0x3   :  { %3887 = sst [smem:[#allocation22_spill]] %s3874_s6 }
   0x4   :  { %13 = vsyncpa [#allocation3], 0 }
   0x5   :  { %15 = vsyncpa [#allocation3 + $0x1], 0 }
   0x6   :  { %16 = vsyncpa [#allocation6], 0 }
   0x7   :  { %18 = vsyncpa [#allocation6 + $0x1], 0 }
   0x8   :  { %19 = vsyncpa [#allocation9], 0 }
   0x9   :  { %20 = vsyncpa [#allocation4], 0 }
   0xa   :  { %22 = vsyncpa [#allocation4 + $0x1], 0  ;;  %s3258_s27 = smov 0   ;;  %s3260_s28 = smov 0  }
   0xb   :  { %s3262_s29 = smov 0   ;;  %s3264_s30 = smov 0  }
   0xc LB: > { %3888 = sst [smem:[#allocation16_spill]] %s3186_s29  ;;  %s3279_s9 = sadd.s32 4294967295, %s3190_s30   ;;  %s3190_s30 = sphi %s3264_s30, %s3914_s30   ;;  %s3186_s29 = sphi %s3262_s29, %s3916_s29   ;;  %s3182_s28 = sphi %s3260_s28, %s3918_s28   ;;  %s3178_s27 = sphi %s3258_s27, %s3917_s27  }
   0xd   : > { %s2618_s10 = sadd.s32 4294967294, %s3190_s30   ;;  %p48_p0 = scmp.ne.s32.totalorder %s3182_s28, %s3178_s27 }
   0xe   : > { %p3877_p1 = scmp.eq.s32.totalorder %s3279_s9, 0  ;;  %p230_p3 = scmp.eq.s32.totalorder %s2618_s10, 1 }
   0xf   : > { %p2619_p5 = scmp.ge.s32.totalorder %s3190_s30, 1  ;;  %p237_p7 = scmp.lt.s32.totalorder %s3190_s30, 3 }
  0x10   : > { %p3288_p4 = por %p3877_p1, %p48_p0  ;;  %p3293_p6 = por %p230_p3, %p48_p0 }
  0x11   : > { %p3298_p8 = pnand %p2619_p5, %p237_p7  ;;  %s3192_s14 = smov [#allocation7]  }
  0x12   : > { %s3889_s11 = scalar_select %p3288_p4, 1, 0 }
  0x13   : > { %s3890_s12 = scalar_select %p3293_p6, 1, 0 }
  0x14   : > { %s3892_s13 = scalar_select %p3298_p8, 1, 0 }
  0x15   : > { %3891 = sst [smem:[#allocation17_spill]] %s3890_s12  ;;  %s255_s15 = sshll.u32 %s3192_s14, 4  ;;  %s256_s15 = int_to_ptr.vmem [resolvable:$true] %s255_s15 }
  0x16   : > { %p2835_p9 = pneg %p3298_p8  ;;  %s3193_s17 = smov [#allocation8]  }
  0x17   : > { %s271_s18 = sshll.u32 %s3193_s17, 4  ;;  %s3017_s19 = scalar_lea.vmem %s256_s15, 3072  ;;  %s272_s18 = int_to_ptr.vmem [resolvable:$true] %s271_s18 }
  0x18   : > { %p3307_p11 = pnand %p2835_p9, %p3877_p1  ;;  %p3018_p13 = scmp.ne.s32.totalorder %s256_s15, %s3017_s19 }
  0x19   : > { %p3025_p5 = scmp.lt.s32.totalorder %s256_s15, %s256_s15  ;;  %p3026_p7 = scmp.lt.s32.totalorder %s3017_s19, %s3017_s19 }
  0x1a   : > { %p3008_p12 = pneg %p3307_p11 }
  0x1b   : > { %p3027_p10 = por %p3026_p7, %p3025_p5 }
  0x1c   : > { %p3020_p0 = pnand %p3018_p13, %p3008_p12 }
  0x1e   : > { %p3021_p3 = pneg %p3020_p0 }
  0x20   : > { %p3028_p9 = pnand %p3027_p10, %p3021_p3 }
  0x22   : > { %3031 = shalt.err (!%p3028_p9)
}
  0x23   : > { %s3194_s20 = smov 192   ;;  %s3195_s21 = smov 12  }
  0x24   : > { %s3894_s4 = sld [smem:[#allocation21_spill]]  ;;  %s3043_s24 = scalar_lea.vmem %s272_s18, 1024 }
  0x25   : > { %p3044_p1 = scmp.ne.s32.totalorder %s272_s18, %s3043_s24  ;;  %p3051_p2 = scmp.lt.s32.totalorder %s272_s18, %s272_s18 }
  0x26   : > { %p3052_p6 = scmp.lt.s32.totalorder %s3043_s24, %s3043_s24 }
  0x27   : > { %p3046_p13 = pnand %p3044_p1, %p3008_p12 }
  0x28   : > { %p3053_p5 = por %p3052_p6, %p3051_p2 }
  0x29   : > { %p3047_p0 = pneg %p3046_p13 }
  0x2a   : > { %2838 = dma.hbm_to_vmem [thread:$0]  (!%p3307_p11), %s3894_s4, 3072, %s256_s15, [#allocation6], %s3194_s20, %s3194_s20, %s3195_s21  }
  0x2b   : > { %p3054_p10 = pnand %p3053_p5, %p3047_p0 }
  0x2d   : > { %3057 = shalt.err (!%p3054_p10)
}
  0x2e   : > { %s3196_s25 = smov 64   ;;  %s3197_s26 = smov 4  }
  0x2f   : > { %s3895_s6 = sld [smem:[#allocation22_spill]]  ;;  %s3330_s15 = sadd.s32 1, %s3190_s30  }
  0x30   : > { %3896 = sst [smem:[#allocation18_spill]] %s3330_s15  ;;  %s32_s17 = ssub.s32 %s3190_s30, %s3330_s15 }
  0x31   : > { %p33_p1 = scmp.eq.s32.totalorder %s32_s17, 0  ;;  %s35_s19 = sadd.s32 1, %s3186_s29 }
  0x32   : > { %p42_p2 = scmp.ne.s32.totalorder %s3186_s29, %s3182_s28  ;;  %p43_p6 = scmp.eq.s32.totalorder %s3190_s30, 0 }
  0x33   : > { %s3339_s20 = scalar_select %p33_p1, %s3186_s29, %s35_s19  }
  0x34   : > { %p44_p12 = por %p43_p6, %p42_p2  ;;  %p3898_p3 = scmp.eq.s32.totalorder %s3279_s9, 1 }
  0x35   : > { %2841 = dma.hbm_to_vmem [thread:$0]  (!%p3307_p11), %s3895_s6, 1024, %s272_s18, [#allocation9], %s3196_s25, %s3196_s25, %s3197_s26  }
  0x36   : > { %3897 = sst [smem:[#allocation19_spill]] %s3339_s20  ;;  %p3343_p7 = por %p3898_p3, %p42_p2 }
  0x37   : > { %p2855_p9 = scmp.lt.s32.totalorder %s3190_s30, 2  ;;  %s3349_s16 = sand.u32 1, %s3186_s29  }
  0x38   : > { %s3899_s21 = scalar_select %p3343_p7, 1, 0 }
  0x39   : > { %s2623_s18 = sshll.u32 %s3349_s16, 4  ;;  %s2697_s22 = sshll.u32 %s3190_s30, 8 }
  0x3a   : > { %s3900_s0 = sld [smem:[#allocation20_spill]]  ;;  %s292_s26 = scalar_lea.vmem [#allocation2], %s2623_s18 }
  0x3b   : > { %s299_s10 = sshll.u32 %s292_s26, 4  ;;  %p3360_p11 = pnand %p2855_p9, %p44_p12  ;;  %s3358_s10 = int_to_ptr.vmem [resolvable:$true] %s299_s10 }
  0x3d   : > { %p3060_p0 = pneg %p3360_p11 }
  0x40   : > { %s3356_s25 = scalar_lea.hbm %s3900_s0, %s2697_s22  ;;  %s3063_s23 = scalar_lea.hbm %s3900_s0, 512 }
  0x41   : > { %s3058_s4 = scalar_lea.hbm %s3356_s25, 256  ;;  %p3064_p1 = scmp.lt.s32.totalorder %s3356_s25, %s3900_s0 }
  0x42   : > { %p3059_p13 = scmp.ne.s32.totalorder %s3356_s25, %s3058_s4  ;;  %p3065_p2 = scmp.lt.s32.totalorder %s3063_s23, %s3058_s4 }
  0x44   : > { %p3061_p5 = pnand %p3060_p0, %p3059_p13  ;;  %p3066_p6 = por %p3065_p2, %p3064_p1 }
  0x46   : > { %p3062_p10 = pneg %p3061_p5 }
  0x48   : > { %p3067_p12 = pnand %p3066_p6, %p3062_p10 }
  0x4a   : > { %3070 = shalt.err (!%p3067_p12)
}
  0x4b   : > { %s3071_s17 = scalar_lea.vmem %s3358_s10, 256  ;;  %s3198_s18 = smov [#allocation2]  }
  0x4c   : > { %p3072_p3 = scmp.ne.s32.totalorder %s3358_s10, %s3071_s17  ;;  %s3076_s22 = sshll.u32 %s3198_s18, 4  ;;  %s3077_s22 = int_to_ptr.vmem [resolvable:$false] %s3076_s22 }
  0x4d   : > { %s3078_s19 = scalar_lea.vmem %s3077_s22, 512  ;;  %p3079_p5 = scmp.lt.s32.totalorder %s3358_s10, %s3077_s22 }
  0x4e   : > { %p3074_p9 = pnand %p3072_p3, %p3060_p0  ;;  %p3080_p7 = scmp.lt.s32.totalorder %s3078_s19, %s3071_s17 }
  0x50   : > { %p3075_p13 = pneg %p3074_p9  ;;  %p3081_p4 = por %p3080_p7, %p3079_p5 }
  0x52   : > { %p3082_p1 = pnand %p3081_p4, %p3075_p13 }
  0x54   : > { %3085 = shalt.err (!%p3082_p1)
}
  0x55   : > { %s3199_s4 = smov 128   ;;  %s3200_s23 = smov 8  }
  0x56   : > { %s3902_s24 = scalar_lea.sflag [#allocation3], %s3349_s16  ;;  %s2626_s26 = sshll.u32 %s3190_s30, 4 }
  0x57   : > { %2845 = dma.hbm_to_vmem [thread:$0]  (!%p3360_p11), %s3356_s25, 256, %s3358_s10, %s3902_s24, %s3199_s4, %s3199_s4, %s3200_s23  }
  0x58   : > { %s312_s18 = scalar_lea.vmem [#allocation5], %s3349_s16  ;;  %s317_s0 = scalar_lea.hbm %s3869_s1, %s2626_s26 }
  0x59   : > { %s319_s22 = sshll.u32 %s312_s18, 4  ;;  %s3903_s6 = sand.u32 1, %s3190_s30   ;;  %s320_s22 = int_to_ptr.vmem [resolvable:$true] %s319_s22 }
  0x5a   : > { %s310_s20 = scalar_lea.sflag [#allocation6], %s3903_s6  ;;  %s3086_s29 = scalar_lea.hbm %s317_s0, 16 }
  0x5b   : > { %p3087_p4 = scmp.ne.s32.totalorder %s317_s0, %s3086_s29  ;;  %s3091_s25 = scalar_lea.hbm %s3869_s1, 32 }
  0x5c   : > { %p3092_p2 = scmp.lt.s32.totalorder %s317_s0, %s3869_s1  ;;  %p3093_p6 = scmp.lt.s32.totalorder %s3091_s25, %s3086_s29 }
  0x5d   : > { %p3089_p7 = pnand %p3087_p4, %p3060_p0 }
  0x5e   : > { %p3094_p12 = por %p3093_p6, %p3092_p2 }
  0x5f   : > { %p3090_p10 = pneg %p3089_p7 }
  0x61   : > { %p3095_p3 = pnand %p3094_p12, %p3090_p10 }
  0x63   : > { %3098 = shalt.err (!%p3095_p3)
}
  0x64   : > { %s3099_s4 = scalar_lea.vmem %s320_s22, 16  ;;  %s3201_s6 = smov [#allocation5]  }
  0x65   : > { %p3100_p9 = scmp.ne.s32.totalorder %s320_s22, %s3099_s4  ;;  %s3104_s23 = sshll.u32 %s3201_s6, 4  ;;  %s3105_s23 = int_to_ptr.vmem [resolvable:$false] %s3104_s23 }
  0x66   : > { %s3106_s12 = scalar_lea.vmem %s3105_s23, 32  ;;  %p3107_p1 = scmp.lt.s32.totalorder %s320_s22, %s3105_s23 }
  0x67   : > { %p3102_p13 = pnand %p3100_p9, %p3060_p0  ;;  %p3108_p4 = scmp.lt.s32.totalorder %s3106_s12, %s3099_s4 }
  0x69   : > { %p3103_p5 = pneg %p3102_p13  ;;  %p3109_p7 = por %p3108_p4, %p3107_p1 }
  0x6b   : > { %p3110_p8 = pnand %p3109_p7, %p3103_p5 }
  0x6d   : > { %3113 = shalt.err (!%p3110_p8)
}
  0x6e   : > { %2848 = dma.hbm_to_vmem [thread:$0]  (!%p3360_p11), %s317_s0, 16, %s320_s22, %s310_s20  }
  0x6f   : > { %p3904_p10 = scmp.ne.s32.totalorder %s3892_s13, 0 }
  0x70   : > { %s3416_s29 = sand.u32 (!%p3904_p10), 1, %s3182_s28   ;;  %p3905_p0 = scmp.ne.s32.totalorder (!%p3904_p10), %s3889_s11, 0 }
  0x71   : > { %328 = sbr.rel (%p3904_p10) target bundleno = 1774 (0x6ee), region = 52  ;;  %s2628_s15 = sshll.u32 (!%p3904_p10), %s3416_s29, 4 }
  0x72   : > { %s331_s24 = scalar_lea.sflag (!%p3904_p10), [#allocation3], %s3416_s29  ;;  %s3422_s26 = scalar_lea.vmem (!%p3904_p10), [#allocation2], %s2628_s15 }
  0x76   : > { %3157 = dma.done.wait (%p3905_p0), %s331_s24, 256  }
  0x77   : > { %3159 = vsyncadd (%p3905_p0), %s331_s24, 4294967040  ;;  %s339_s0 = sand.u32 1, %s3279_s9   ;;  %s342_s20 = scalar_lea.vmem [#allocation5], %s3416_s29 }
  0x78   : > { %s340_s13 = scalar_lea.sflag [#allocation6], %s339_s0 }
  0x79   : > { %3161 = dma.done.wait (%p3905_p0), %s340_s13, 16  }
  0x7a   : > { %3163 = vsyncadd (%p3905_p0), %s340_s13, 4294967280  ;;  %p3906_p8 = scmp.eq.s32.totalorder %s3279_s9, 0 }
  0x7c   : > { %3165 = dma.done.wait (%p3906_p8), [#allocation6], 3072   ;;  %p3907_p11 = pmov %p3906_p8 }
  0x7d   : > { %p3908_p2 = pmov %p3906_p8 }
  0x7e   : > { %3167 = vsyncadd (%p3907_p11), [#allocation6], 4294964224 }
  0x7f   : > { %3169 = dma.done.wait (%p3908_p2), [#allocation9], 1024   ;;  %p3909_p6 = pmov %p3908_p2 }
  0x80   : > { %v388_v0 = vld [vmem:[%s3422_s26] sm:$0xff]  ;;  %v389_v1 = vld [vmem:[%s3422_s26 + $0x8] sm:$0xff]  ;;  %v3202_v13 = vmov 0.0   ;;  %v3203_v30 = vmov 0   ;;  %vm3204_vm0 = vmmov 0   ;;  %v480_v63 = vlaneseq  ;;  %s3205_s25 = smov 96  }
  0x81   : > { %3171 = vsyncadd (%p3909_p6), [#allocation9], 4294966272  ;;  %392 = vadd.xlane.f32.xlu0 %v388_v0  ;;  %v2924_v10 = vld [vmem:[#allocation7 + $0xac] ss:$12 sps:$4 sm:$0xff]   ;;  %v2926_v11 = vld [vmem:[#allocation7 + $0xa8] ss:$12 sps:$4 sm:$0xff]   ;;  %2733 = vmatprep.subr.bf16.mxu1 %v3202_v13 }
  0x82   : > { %v2927_v12 = vld [vmem:[#allocation7 + $0xb0] ss:$12 sps:$4 sm:$0xff]   ;;  %623 = vmatprep.subr.bf16.mxu0 %v2924_v10  ;;  %v2928_v14 = vld [vmem:[#allocation7 + $0x94] ss:$12 sps:$4 sm:$0xff]   ;;  %v2931_v16 = vld [vmem:[#allocation7 + $0x98] ss:$12 sps:$4 sm:$0xff]   ;;  %655 = vmatprep.mubr.bf16.mxu0 %v3203_v30 }
  0x83   : > { %624 = vmatpush1.bf16.msra.mxu0 %v2926_v11  ;;  %2734 = vmatpush3.bf16.msra.mxu1 %v2927_v12  ;;  %v2930_v15 = vld [vmem:[#allocation7 + $0x90] ss:$12 sps:$4 sm:$0xff]   ;;  %v2934_v18 = vld [vmem:[#allocation7 + $0x78] ss:$12 sps:$4 sm:$0xff]   ;;  %v2935_v19 = vld [vmem:[#allocation7 + $0x80] ss:$12 sps:$4 sm:$0xff]  }
  0x84   : > { %2735 = vmatprep.subr.bf16.mxu1 %v3202_v13  ;;  %625 = vmatprep.subr.bf16.mxu0 %v2928_v14  ;;  %v2932_v17 = vld [vmem:[#allocation7 + $0x7c] ss:$12 sps:$4 sm:$0xff]   ;;  %v2936_v20 = vld [vmem:[#allocation7 + $0x64] ss:$12 sps:$4 sm:$0xff]   ;;  %v2938_v21 = vld [vmem:[#allocation7 + $0x60] ss:$12 sps:$4 sm:$0xff]  }
  0x85   : > { %394 = vadd.xlane.f32.xlu0 %v389_v1  ;;  %v2939_v22 = vld [vmem:[#allocation7 + $0x68] ss:$12 sps:$4 sm:$0xff]   ;;  %v2940_v23 = vld [vmem:[#allocation7 + $0x4c] ss:$12 sps:$4 sm:$0xff]   ;;  %v2943_v25 = vld [vmem:[#allocation7 + $0x50] ss:$12 sps:$4 sm:$0xff]   ;;  %2749 = vmatprep.mubr.msk.bf16.mxu1 %vm3204_vm0, %v3202_v13 }
  0x86   : > { %v2942_v24 = vld [vmem:[#allocation7 + $0x48] ss:$12 sps:$4 sm:$0xff]   ;;  %v2946_v27 = vld [vmem:[#allocation7 + $0x30] ss:$12 sps:$4 sm:$0xff]   ;;  %v2947_v28 = vld [vmem:[#allocation7 + $0x38] ss:$12 sps:$4 sm:$0xff]  }
  0x87   : > { %626 = vmatpush1.bf16.msra.mxu0 %v2930_v15  ;;  %2736 = vmatpush3.bf16.msra.mxu1 %v2931_v16  ;;  %v2944_v26 = vld [vmem:[#allocation7 + $0x34] ss:$12 sps:$4 sm:$0xff]   ;;  %v2948_v29 = vld [vmem:[#allocation7 + $0x1c] ss:$12 sps:$4 sm:$0xff]   ;;  %v2950_v31 = vld [vmem:[#allocation7 + $0x18] ss:$12 sps:$4 sm:$0xff]  }
  0x88   : > { %2737 = vmatprep.subr.bf16.mxu1 %v3202_v13  ;;  %627 = vmatprep.subr.bf16.mxu0 %v2932_v17  ;;  %v2951_v32 = vld [vmem:[#allocation7 + $0x20] ss:$12 sps:$4 sm:$0xff]   ;;  %v2952_v33 = vld [vmem:[#allocation7 + $0x4] ss:$12 sps:$4 sm:$0xff]   ;;  %v2955_v35 = vld [vmem:[#allocation7 + $0x8] ss:$12 sps:$4 sm:$0xff]  }
  0x89   : > { %v2954_v34 = vld [vmem:[#allocation7] ss:$12 sps:$4 sm:$0xff]   ;;  %v2632_v52 = vld [vmem:[%s3870_s2] ss:$0 sm:$0xff]  ;;  %s3206_s10 = smov 64   ;;  %s3207_s16 = smov 32  }
  0x8a   : > { %v2633_v58 = vld [vmem:[%s3871_s3] ss:$0 sm:$0xff]  ;;  %vm1613_vm5 = vcmask 261120   ;;  %vm1802_vm8 = vcmask 130048   ;;  %vm2369_vm9 = vcmask 523264   ;;  %vm2372_vm10 = vcmask 785408  }
  0x8b   : > { %628 = vmatpush1.bf16.msra.mxu0 %v2934_v18  ;;  %2738 = vmatpush3.bf16.msra.mxu1 %v2935_v19  ;;  %s386_s23 = scalar_lea.vmem [#allocation10], %s2628_s15  ;;  %s2698_s24 = sshll.u32 %s3279_s9, 8 }
  0x8c   : > { %2739 = vmatprep.subr.bf16.mxu1 %v3202_v13  ;;  %629 = vmatprep.subr.bf16.mxu0 %v2936_v20  ;;  %s2506_s12 = sshll.u32 %s386_s23, 4  ;;  %s2493_s15 = scalar_lea.sflag [#allocation4], %s3416_s29  ;;  %s3819_s12 = int_to_ptr.vmem [resolvable:$true] %s2506_s12 }
  0x8d   : > { %s3114_s11 = scalar_lea.vmem %s3819_s12, 256  ;;  %p3910_p3 = scmp.ne.s32.totalorder %s3899_s21, 0 }
  0x8e   : > { %p3115_p12 = scmp.ne.s32.totalorder %s3819_s12, %s3114_s11  ;;  %s3210_s9 = smov [#allocation10]  }
  0x8f   : > { %630 = vmatpush1.bf16.msra.mxu0 %v2938_v21  ;;  %2740 = vmatpush3.bf16.msra.mxu1 %v2939_v22  ;;  %s3118_s14 = sshll.u32 %s3210_s9, 4  ;;  %s3119_s14 = int_to_ptr.vmem [resolvable:$false] %s3118_s14 }
  0x90   : > { %631 = vmatprep.subr.bf16.mxu0 %v2940_v23  ;;  %2741 = vmatprep.subr.bf16.mxu1 %v3202_v13  ;;  %v3208_v23 = vmov 1983009808   ;;  %p3116_p9 = pnand %p3115_p12, %p3910_p3  ;;  %s3120_s18 = scalar_lea.vmem %s3119_s14, 512 }
  0x91   : > { %p3121_p5 = scmp.lt.s32.totalorder %s3819_s12, %s3119_s14  ;;  %p3122_p1 = scmp.lt.s32.totalorder %s3120_s18, %s3114_s11 }
  0x92   : > { %p3117_p13 = pneg %p3116_p9 }
  0x93   : > { %632 = vmatpush1.bf16.msra.mxu0 %v2942_v24  ;;  %2742 = vmatpush3.bf16.msra.mxu1 %v2943_v25  ;;  %v748_v24 = vunpack.c.l.s4 %v3208_v23  ;;  %p3123_p4 = por %p3122_p1, %p3121_p5 }
  0x94   : > { %633 = vmatprep.subr.bf16.mxu0 %v2944_v26  ;;  %2743 = vmatprep.subr.bf16.mxu1 %v3202_v13 }
  0x95   : > { %p3124_p7 = pnand %p3123_p4, %p3117_p13 }
  0x97   : > { %634 = vmatpush1.bf16.msra.mxu0 %v2946_v27  ;;  %2744 = vmatpush3.bf16.msra.mxu1 %v2947_v28  ;;  %v749_v27 = vunpack.c.0.s8 %v748_v24 }
  0x98   : > { %635 = vmatprep.subr.bf16.mxu0 %v2948_v29  ;;  %2745 = vmatprep.subr.bf16.mxu1 %v3202_v13  ;;  %v3209_v29 = vmov 1934713408  }
  0x99   : > { %v780_v30 = vunpack.c.l.s4 %v3209_v29 }
  0x9b   : > { %636 = vmatpush1.bf16.msra.mxu0 %v2950_v31  ;;  %2746 = vmatpush3.bf16.msra.mxu1 %v2951_v32 }
  0x9c   : > { %637 = vmatprep.subr.bf16.mxu0 %v2952_v33  ;;  %2747 = vmatprep.subr.bf16.mxu1 %v3202_v13 }
  0x9f   : > { %638 = vmatpush1.bf16.msra.mxu0 %v2954_v34  ;;  %2748 = vmatpush3.bf16.msra.mxu1 %v2955_v35 }
  0xa0   : > { %2753 = vmatprep.subr.bf16.mxu1 %v3202_v13  ;;  %2777 = vmatprep.subr.bf16.mxu0 %v3202_v13 }
 0x10a   : > { %v393_v2 = vpop.xlane.xlu0 %392 }
 0x10b   : > { %v397_v3 = vmul.f32 0.0078125, %v393_v2  ;;  %v478_v2 = vld [vmem:[%s3873_s5] sm:$0x7] }
 0x10d   : > { %v3444_v4 = vsub.f32 %v388_v0, %v397_v3  ;;  %v3477_v0 = vshrl.u32 %v480_v63, 7 }
 0x10e   : > { %v395_v5 = vpop.xlane.xlu0 %394 }
 0x10f   : > { %v398_v6 = vmul.f32 0.0078125, %v395_v5  ;;  %v401_v7 = vmul.f32 %v3444_v4, %v3444_v4  ;;  %v415_v54 = vmul.f32 %v2632_v52, %v3444_v4  ;;  %v486_v3 = vsub.s32 1, %v3477_v0 }
 0x110   : > { %v490_v19 = vsub.s32 2, %v3477_v0  ;;  %v3527_v32 = vsub.s32 %v749_v27, %v3477_v0 }
 0x111   : > { %v3448_v8 = vsub.f32 %v389_v1, %v398_v6  ;;  %403 = vadd.xlane.f32.xlu1 %v401_v7  ;;  %v482_v1 = vsub.s32 0, %v3477_v0  ;;  %v487_v5 = vrot.slane %v478_v2, %v486_v3 }
 0x112   : > { %v491_v20 = vrot.slane %v478_v2, %v490_v19 }
 0x113   : > { %v402_v9 = vmul.f32 %v3448_v8, %v3448_v8  ;;  %v416_v55 = vmul.f32 %v2632_v52, %v3448_v8  ;;  %v483_v4 = vrot.slane %v478_v2, %v482_v1 }
 0x115   : > { %405 = vadd.xlane.f32.xlu1 %v402_v9 }
 0x19a   : > { %v404_v36 = vpop.xlane.xlu1 %403 }
 0x19b   : > { %v407_v37 = vmul.f32 0.007874016, %v404_v36  ;;  %v781_v36 = vunpack.c.0.s8 %v780_v30 }
 0x19d   : > { %2964 = vrsqrt.f32 %v407_v37  ;;  %vm419_vm1 = vcmp.eq.f32.partialorder %v407_v37, inf  ;;  %v422_v42 = vand.u32 2147483648, %v407_v37  ;;  %vm421_vm2 = vcmp.eq.f32.partialorder %v407_v37, 0.0 }
 0x19e   : > { %v406_v38 = vpop.xlane.xlu1 %405 }
 0x19f   : > { %v408_v39 = vmul.f32 0.007874016, %v406_v38 }
 0x1a1   : > { %2966 = vrsqrt.f32 %v408_v39  ;;  %vm426_vm3 = vcmp.eq.f32.partialorder %v408_v39, inf  ;;  %v429_v48 = vand.u32 2147483648, %v408_v39  ;;  %vm428_vm4 = vcmp.eq.f32.partialorder %v408_v39, 0.0 }
 0x1aa   : > { %v2965_v40 = vpop.eup %2964 }
 0x1ab   : > { %v418_v41 = vmul.f32 %v2965_v40, %v407_v37 }
 0x1ad   : > { %v420_v43 = vsel %vm419_vm1, %v407_v37, %v418_v41 }
 0x1ae   : > { %v2967_v44 = vpop.eup %2966  ;;  %v423_v45 = vsel %vm421_vm2, %v422_v42, %v420_v43 }
 0x1af   : > { %v431_v46 = vadd.f32 1e-06, %v423_v45  ;;  %v425_v47 = vmul.f32 %v2967_v44, %v408_v39  ;;  %v3534_v45 = vsub.s32 %v781_v36, %v3477_v0 }
 0x1b1   : > { %2968 = vrcp.f32 %v431_v46  ;;  %v427_v49 = vsel %vm426_vm3, %v408_v39, %v425_v47 }
 0x1b2   : > { %v430_v50 = vsel %vm428_vm4, %v429_v48, %v427_v49 }
 0x1b3   : > { %v432_v51 = vadd.f32 1e-06, %v430_v50 }
 0x1b5   : > { %2970 = vrcp.f32 %v432_v51 }
 0x1be   : > { %v2969_v53 = vpop.eup %2968 }
 0x1bf   : > { %v434_v56 = vmul.f32 %v2969_v53, %v415_v54 }
 0x1c1   : > { %v443_v60 = vadd.f32 %v2633_v58, %v434_v56 }
 0x1c2   : > { %v2971_v57 = vpop.eup %2970 }
 0x1c3   : > { %v436_v59 = vmul.f32 %v2971_v57, %v416_v55 }
 0x1c5   : > { %v444_v61 = vadd.f32 %v2633_v58, %v436_v59 }
 0x1c7   : > { %v445_v62 = vpack.c.bf16 %v444_v61, %v443_v60 }
 0x1c9   : > { %656 = vmatmul.mubr.bf16.vlgmr.msra.gmra.mxu0 %v445_v62  ;;  %2750 = vmatmul.mubr.bf16.vlgmr.msra.gmra.mxu1 %v445_v62 }
 0x1ca   : > { %2755 = vmatprep.mubr.msk.bf16.mxu1 %vm3204_vm0, %v3202_v13  ;;  %2779 = vmatprep.mubr.msk.bf16.mxu0 %vm3204_vm0, %v3202_v13 }
 0x289   : > { %v657_v6 = vpop.f32.mrf.mxu0  ;;  %v700_v7 = vpop.f32.mrf.mxu1 }
 0x28a   : > { %v3484_v8 = vadd.f32 %v657_v6, %v483_v4  ;;  %v3506_v21 = vadd.f32 %v700_v7, %v491_v20 }
 0x28b   : > { %v659_v9 = vpop.f32.mrf.mxu0  ;;  %v2751_v10 = vpop.f32.mrf.mxu1 }
 0x28c   : > { %v660_v11 = vadd.f32 %v659_v9, %v487_v5  ;;  %727 = vrot.lane.b32.xlu0 %v3484_v8, %s3205_s25 }
 0x28d   : > { %v661_v12 = vpop.f32.mrf.mxu0  ;;  %v703_v14 = vpop.f32.mrf.mxu1 }
 0x28e   : > { %1029 = vrot.lane.b32.xlu1 %v660_v11, %s3206_s10  ;;  %v3489_v16 = vadd.f32 %v661_v12, %v483_v4  ;;  %v3516_v22 = vadd.f32 %v703_v14, %v491_v20 }
 0x28f   : > { %v2752_v15 = vpop.f32.mrf.mxu1  ;;  %v663_v17 = vpop.f32.mrf.mxu0 }
 0x290   : > { %1023 = vrot.lane.b32.xlu0 %v660_v11, %s3205_s25  ;;  %v3494_v18 = vadd.f32 %v663_v17, %v487_v5 }
 0x292   : > { %729 = vrot.lane.b32.xlu1 %v3489_v16, %s3205_s25 }
 0x294   : > { %1035 = vrot.lane.b32.xlu0 %v660_v11, %s3207_s16 }
 0x296   : > { %1025 = vrot.lane.b32.xlu1 %v3494_v18, %s3205_s25 }
 0x298   : > { %733 = vrot.lane.b32.xlu0 %v3484_v8, %s3206_s10 }
 0x29a   : > { %1031 = vrot.lane.b32.xlu1 %v3494_v18, %s3206_s10 }
 0x29c   : > { %739 = vrot.lane.b32.xlu0 %v3484_v8, %s3207_s16 }
 0x29e   : > { %1037 = vrot.lane.b32.xlu1 %v3494_v18, %s3207_s16 }
 0x2a0   : > { %1319 = vrot.lane.b32.xlu0 %v3506_v21, %s3205_s25 }
 0x2a2   : > { %735 = vrot.lane.b32.xlu1 %v3489_v16, %s3206_s10 }
 0x2a6   : > { %741 = vrot.lane.b32.xlu1 %v3489_v16, %s3207_s16 }
 0x2aa   : > { %1321 = vrot.lane.b32.xlu1 %v3516_v22, %s3205_s25 }
 0x2ae   : > { %1325 = vrot.lane.b32.xlu1 %v3506_v21, %s3206_s10 }
 0x2b2   : > { %1327 = vrot.lane.b32.xlu1 %v3516_v22, %s3206_s10 }
 0x2fe   : > { %v728_v25 = vpop.permute.xlu0 %727 }
 0x300   : > { %v1030_v26 = vpop.permute.xlu1 %1029 }
 0x301   : > { %v1041_v33 = vcombine.low %v660_v11, %v1030_v26  ;;  %v1042_v34 = vcombine.high %v660_v11, %v1030_v26 }
 0x302   : > { %v1024_v28 = vpop.permute.xlu0 %1023 }
 0x303   : > { %v1049_v40 = vrot.slane %v1041_v33, %v3527_v32  ;;  %v1056_v43 = vrot.slane %v1042_v34, %v3527_v32 }
 0x304   : > { %v3524_v31 = vpop.permute.xlu1 %729 }
 0x306   : > { %v1036_v35 = vpop.permute.xlu0 %1035 }
 0x307   : > { %v1057_v37 = vcombine.low %v1024_v28, %v1036_v35  ;;  %v1058_v38 = vcombine.high %v1024_v28, %v1036_v35 }
 0x308   : > { %v1026_v39 = vpop.permute.xlu1 %1025 }
 0x309   : > { %v1065_v41 = vrot.slane %v1057_v37, %v3527_v32  ;;  %v1072_v42 = vrot.slane %v1058_v38, %v3527_v32 }
 0x30a   : > { %v734_v44 = vpop.permute.xlu0 %733 }
 0x30b   : > { %v1073_v46 = vcombine.low %v1049_v40, %v1065_v41  ;;  %v1074_v47 = vcombine.high %v1049_v40, %v1065_v41  ;;  %v1089_v48 = vcombine.low %v1056_v43, %v1072_v42  ;;  %v1090_v49 = vcombine.high %v1056_v43, %v1072_v42 }
 0x30c   : > { %v1032_v50 = vpop.permute.xlu1 %1031  ;;  %v745_v51 = vcombine.low %v3484_v8, %v734_v44  ;;  %v746_v55 = vcombine.high %v3484_v8, %v734_v44 }
 0x30d   : > { %v1081_v53 = vrot.slane %v1073_v46, %v3534_v45  ;;  %v1088_v54 = vrot.slane %v1074_v47, %v3534_v45  ;;  %v1097_v56 = vrot.slane %v1089_v48, %v3534_v45  ;;  %v1104_v57 = vrot.slane %v1090_v49, %v3534_v45 }
 0x30e   : > { %v740_v52 = vpop.permute.xlu0 %739  ;;  %v753_v61 = vrot.slane %v745_v51, %v3527_v32  ;;  %v1109_v62 = vcombine.low %v3494_v18, %v1032_v50  ;;  %v1110_v1 = vcombine.high %v3494_v18, %v1032_v50  ;;  %v760_v8 = vrot.slane %v746_v55, %v3527_v32 }
 0x30f   : > { %v761_v58 = vcombine.low %v728_v25, %v740_v52  ;;  %v762_v59 = vcombine.high %v728_v25, %v740_v52  ;;  %v1177_v6 = vcombine.low %v1081_v53, %v1088_v54  ;;  %v2663_v7 = vcombine.high %v1081_v53, %v1088_v54 }
 0x310   : > { %v1038_v60 = vpop.permute.xlu1 %1037  ;;  %v1193_v9 = vcombine.low %v1097_v56, %v1104_v57  ;;  %v2664_v10 = vcombine.high %v1097_v56, %v1104_v57  ;;  %v1117_v14 = vrot.slane %v1109_v62, %v3527_v32  ;;  %v1124_v15 = vrot.slane %v1110_v1, %v3527_v32 }
 0x311   : > { %v769_v2 = vrot.slane %v761_v58, %v3527_v32  ;;  %v776_v3 = vrot.slane %v762_v59, %v3527_v32  ;;  %v1125_v4 = vcombine.low %v1026_v39, %v1038_v60  ;;  %v1126_v5 = vcombine.high %v1026_v39, %v1038_v60 }
 0x312   : > { %v3555_v30 = vrot.slane %v1177_v6, %v3527_v32  ;;  %v3558_v33 = vrot.slane %v2663_v7, %v3527_v32  ;;  %v3561_v34 = vrot.slane %v1193_v9, %v3527_v32  ;;  %v3564_v35 = vrot.slane %v2664_v10, %v3527_v32 }
 0x313   : > { %v777_v11 = vcombine.low %v753_v61, %v769_v2  ;;  %v778_v12 = vcombine.high %v753_v61, %v769_v2  ;;  %v1133_v17 = vrot.slane %v1125_v4, %v3527_v32  ;;  %v1140_v18 = vrot.slane %v1126_v5, %v3527_v32 }
 0x314   : > { %v793_v23 = vcombine.low %v760_v8, %v776_v3  ;;  %v794_v24 = vcombine.high %v760_v8, %v776_v3  ;;  %v736_v25 = vpop.permute.xlu1 %735  ;;  %v1209_v52 = vcombine.low %v3555_v30, %v3558_v33  ;;  %v1225_v53 = vcombine.low %v3561_v34, %v3564_v35 }
 0x315   : > { %v785_v19 = vrot.slane %v777_v11, %v3534_v45  ;;  %v792_v20 = vrot.slane %v778_v12, %v3534_v45  ;;  %v1141_v26 = vcombine.low %v1117_v14, %v1133_v17  ;;  %v1142_v27 = vcombine.high %v1117_v14, %v1133_v17 }
 0x316   : > { %v1157_v28 = vcombine.low %v1124_v15, %v1140_v18  ;;  %v1158_v29 = vcombine.high %v1124_v15, %v1140_v18  ;;  %v801_v40 = vrot.slane %v793_v23, %v3534_v45  ;;  %v808_v41 = vrot.slane %v794_v24, %v3534_v45 }
 0x317   : > { %v1149_v36 = vrot.slane %v1141_v26, %v3534_v45  ;;  %v1156_v37 = vrot.slane %v1142_v27, %v3534_v45  ;;  %v881_v42 = vcombine.low %v785_v19, %v792_v20  ;;  %v2659_v43 = vcombine.high %v785_v19, %v792_v20 }
 0x318   : > { %v1165_v38 = vrot.slane %v1157_v28, %v3534_v45  ;;  %v1172_v39 = vrot.slane %v1158_v29, %v3534_v45  ;;  %v813_v49 = vcombine.low %v3489_v16, %v736_v25  ;;  %v814_v50 = vcombine.high %v3489_v16, %v736_v25  ;;  %v742_v51 = vpop.permute.xlu1 %741 }
 0x319   : > { %v1245_v44 = vcombine.low %v1149_v36, %v1156_v37  ;;  %v2665_v46 = vcombine.high %v1149_v36, %v1156_v37  ;;  %v897_v58 = vcombine.low %v801_v40, %v808_v41  ;;  %v2660_v59 = vcombine.high %v801_v40, %v808_v41 }
 0x31a   : > { %v1261_v47 = vcombine.low %v1165_v38, %v1172_v39  ;;  %v2666_v48 = vcombine.high %v1165_v38, %v1172_v39  ;;  %v3585_v16 = vrot.slane %v881_v42, %v3527_v32  ;;  %v3588_v60 = vrot.slane %v2659_v43, %v3527_v32 }
 0x31b   : > { %v3579_v54 = vrot.slane %v1245_v44, %v3527_v32  ;;  %v1260_v55 = vrot.slane %v2665_v46, %v3527_v32  ;;  %v829_v61 = vcombine.low %v3524_v31, %v742_v51  ;;  %v830_v62 = vcombine.high %v3524_v31, %v742_v51 }
 0x31c   : > { %v1268_v56 = vrot.slane %v1261_v47, %v3527_v32  ;;  %v1276_v57 = vrot.slane %v2666_v48, %v3527_v32  ;;  %v1217_v1 = vrot.slane %v1209_v52, %v3534_v45  ;;  %v1233_v2 = vrot.slane %v1225_v53, %v3534_v45 }
 0x31d   : > { %v1277_v3 = vcombine.low %v3579_v54, %v1260_v55  ;;  %v821_v5 = vrot.slane %v813_v49, %v3527_v32  ;;  %v828_v6 = vrot.slane %v814_v50, %v3527_v32  ;;  %v837_v7 = vrot.slane %v829_v61, %v3527_v32 }
 0x31e   : > { %v1293_v4 = vcombine.low %v1268_v56, %v1276_v57  ;;  %v844_v8 = vrot.slane %v830_v62, %v3527_v32  ;;  %v3600_v9 = vrot.slane %v897_v58, %v3527_v32  ;;  %v3603_v31 = vrot.slane %v2660_v59, %v3527_v32 }
 0x31f   : > { %v1285_v10 = vrot.slane %v1277_v3, %v3534_v45  ;;  %v845_v12 = vcombine.low %v821_v5, %v837_v7  ;;  %v846_v14 = vcombine.high %v821_v5, %v837_v7  ;;  %v1241_v18 = vcombine.low %v1217_v1, %v1233_v2 }
 0x320   : > { %v1301_v11 = vrot.slane %v1293_v4, %v3534_v45  ;;  %v861_v15 = vcombine.low %v828_v6, %v844_v8  ;;  %v862_v17 = vcombine.high %v828_v6, %v844_v8  ;;  %v913_v26 = vcombine.low %v3585_v16, %v3588_v60 }
 0x321   : > { %v853_v20 = vrot.slane %v845_v12, %v3534_v45  ;;  %v860_v23 = vrot.slane %v846_v14, %v3534_v45  ;;  %v929_v27 = vcombine.low %v3600_v9, %v3603_v31  ;;  %v1210_v50 = vcombine.high %v3555_v30, %v3558_v33 }
 0x322   : > { %v1309_v19 = vcombine.low %v1285_v10, %v1301_v11  ;;  %v869_v24 = vrot.slane %v861_v15, %v3534_v45  ;;  %v876_v25 = vrot.slane %v862_v17, %v3534_v45  ;;  %v921_v44 = vrot.slane %v913_v26, %v3534_v45 }
 0x323   : > { %v949_v29 = vcombine.low %v853_v20, %v860_v23  ;;  %v2661_v36 = vcombine.high %v853_v20, %v860_v23  ;;  %v937_v46 = vrot.slane %v929_v27, %v3534_v45  ;;  %v1310_v49 = vcombine.high %v1285_v10, %v1301_v11 }
 0x324   : > { %v1313_v28 = vpack.c.bf16 %v1309_v19, %v1241_v18  ;;  %v965_v37 = vcombine.low %v869_v24, %v876_v25  ;;  %v2662_v38 = vcombine.high %v869_v24, %v876_v25  ;;  %v1278_v51 = vcombine.high %v3579_v54, %v1260_v55 }
 0x325   : > { %v956_v40 = vrot.slane %v949_v29, %v3527_v32  ;;  %v964_v41 = vrot.slane %v2661_v36, %v3527_v32  ;;  %v1294_v52 = vcombine.high %v1268_v56, %v1276_v57  ;;  %v1242_v59 = vcombine.high %v1217_v1, %v1233_v2  ;;  %v2658_v36 = vld [vmem:[%s342_s20] ss:$0 sm:$0xff]  ;;  %s3824_s20 = scalar_lea.hbm %s3876_s8, %s2698_s24 }
 0x326   : > { %v1618_v39 = vsel %vm1613_vm5, %v1313_v28, 0  ;;  %v972_v42 = vrot.slane %v965_v37, %v3527_v32  ;;  %v980_v43 = vrot.slane %v2662_v38, %v3527_v32  ;;  %v1226_v61 = vcombine.high %v3561_v34, %v3564_v35 }
 0x327   : > { %2754 = vmatpush3.bf16.xpose.msra.mxu1 %v1618_v39  ;;  %v981_v47 = vcombine.low %v956_v40, %v964_v41  ;;  %v945_v62 = vcombine.low %v921_v44, %v937_v46  ;;  %v1314_v4 = vpack.c.bf16 %v1310_v49, %v1242_v59  ;;  %v1292_v5 = vrot.slane %v1278_v51, %v3534_v45 }
 0x328   : > { %2759 = vmatprep.subr.bf16.mxu1 %v3202_v13  ;;  %v997_v48 = vcombine.low %v972_v42, %v980_v43  ;;  %v1308_v6 = vrot.slane %v1294_v52, %v3534_v45  ;;  %v1224_v30 = vrot.slane %v1210_v50, %v3534_v45  ;;  %v1240_v33 = vrot.slane %v1226_v61, %v3534_v45 }
 0x329   : > { %v989_v53 = vrot.slane %v981_v47, %v3534_v45  ;;  %v1665_v54 = vsel %vm1613_vm5, %v1314_v4, 0  ;;  %v982_v34 = vcombine.high %v956_v40, %v964_v41  ;;  %v998_v35 = vcombine.high %v972_v42, %v980_v43 }
 0x32a   : > { %v1005_v58 = vrot.slane %v997_v48, %v3534_v45  ;;  %v1311_v55 = vcombine.low %v1292_v5, %v1308_v6  ;;  %v1243_v57 = vcombine.low %v1224_v30, %v1240_v33  ;;  %v914_v1 = vcombine.high %v3585_v16, %v3588_v60 }
 0x32b   : > { %v930_v2 = vcombine.high %v3600_v9, %v3603_v31  ;;  %v946_v8 = vcombine.high %v921_v44, %v937_v46  ;;  %v996_v11 = vrot.slane %v982_v34, %v3534_v45  ;;  %v1012_v12 = vrot.slane %v998_v35, %v3534_v45 }
 0x32c   : > { %v1013_v3 = vcombine.low %v989_v53, %v1005_v58  ;;  %v1014_v56 = vcombine.high %v989_v53, %v1005_v58  ;;  %v1315_v10 = vpack.c.bf16 %v1311_v55, %v1243_v57  ;;  %v928_v15 = vrot.slane %v914_v1, %v3534_v45  ;;  %v3679_v1 = vpop.permute.xlu1 %1321 }
 0x32d   : > { %v944_v17 = vrot.slane %v930_v2, %v3534_v45  ;;  %v1312_v19 = vcombine.high %v1292_v5, %v1308_v6  ;;  %v1015_v16 = vcombine.low %v996_v11, %v1012_v12  ;;  %v1244_v60 = vcombine.high %v1224_v30, %v1240_v33 }
 0x32e   : > { %v1017_v7 = vpack.c.bf16 %v1013_v3, %v945_v62  ;;  %v1018_v14 = vpack.c.bf16 %v1014_v56, %v946_v8  ;;  %v1712_v18 = vsel %vm1613_vm5, %v1315_v10, 0  ;;  %v1016_v24 = vcombine.high %v996_v11, %v1012_v12  ;;  %v1320_v8 = vpop.permute.xlu0 %1319 }
 0x32f   : > { %v947_v9 = vcombine.low %v928_v15, %v944_v17  ;;  %v1316_v31 = vpack.c.bf16 %v1312_v19, %v1244_v60  ;;  %v948_v25 = vcombine.high %v928_v15, %v944_v17  ;;  %v711_v27 = vand.u32 127, %v480_v63 }
 0x330   : > { %2756 = vmatmul.mubr.msk.bf16.vlgmr.msra.gmra.mxu1 %vm1613_vm5, %v1017_v7  ;;  %v709_v28 = vadd.s32 8, %v3477_v0  ;;  %v1326_v2 = vpop.permute.xlu1 %1325 }
 0x331   : > { %2760 = vmatpush3.bf16.xpose.msra.mxu1 %v1665_v54  ;;  %2761 = vmatprep.mubr.msk.bf16.mxu1 %vm3204_vm0, %v3202_v13  ;;  %v1019_v20 = vpack.c.bf16 %v1015_v16, %v947_v9  ;;  %v1759_v23 = vsel %vm1613_vm5, %v1316_v31, 0  ;;  %v1020_v26 = vpack.c.bf16 %v1016_v24, %v948_v25  ;;  %vm712_vm6 = vcmp.gt.s32.totalorder %v711_v27, %v3477_v0 }
 0x332   : > { %2765 = vmatprep.subr.bf16.mxu1 %v3202_v13  ;;  %v714_v29 = vsel %vm712_vm6, -1e+30, %v3202_v13  ;;  %vm713_vm7 = vcmp.gt.s32.totalorder %v711_v27, %v709_v28 }
 0x333   : > { %v723_v37 = vadd.f32 %v2658_v36, %v714_v29  ;;  %v715_v38 = vsel %vm713_vm7, -1e+30, %v3202_v13 }
 0x334   : > { %v724_v41 = vadd.f32 %v2658_v36, %v715_v38  ;;  %v3681_v10 = vpop.permute.xlu1 %1327 }
 0x338   : > { %2762 = vmatmul.mubr.msk.bf16.vlgmr.msra.gmra.mxu1 %vm1613_vm5, %v1018_v14 }
 0x339   : > { %2766 = vmatpush3.bf16.xpose.msra.mxu1 %v1712_v18  ;;  %2767 = vmatprep.mubr.msk.bf16.mxu1 %vm3204_vm0, %v3202_v13 }
 0x33a   : > { %2771 = vmatprep.subr.bf16.mxu1 %v3202_v13 }
 0x340   : > { %2768 = vmatmul.mubr.msk.bf16.vlgmr.msra.gmra.mxu1 %vm1613_vm5, %v1019_v20 }
 0x341   : > { %2772 = vmatpush3.bf16.xpose.msra.mxu1 %v1759_v23  ;;  %2773 = vmatprep.mubr.msk.bf16.mxu1 %vm3204_vm0, %v3202_v13 }
 0x342   : > { %2783 = vmatprep.subr.bf16.mxu1 %v3202_v13 }
 0x348   : > { %2774 = vmatmul.mubr.msk.bf16.vlgmr.msra.gmra.mxu1 %vm1613_vm5, %v1020_v26 }
 0x349   : > { %2785 = vmatprep.mubr.msk.bf16.mxu1 %vm3204_vm0, %v3202_v13 }
 0x3f0   : > { %v1654_v39 = vpop.f32.mrf.mxu1 }
 0x3f1   : > { %v1655_v40 = vadd.f32 %v1654_v39, %v723_v37 }
 0x3f2   : > { %v2757_v42 = vpop.f32.mrf.mxu1 }
 0x3f3   : > { %v1803_v43 = vsel %vm1802_vm8, %v1655_v40, -inf  ;;  %v1337_v42 = vcombine.low %v3506_v21, %v1326_v2 }
 0x3f4   : > { %1804 = vmax.xlane.f32.xlu0 %v1803_v43  ;;  %v1657_v63 = vpop.f32.mrf.mxu1  ;;  %v1338_v43 = vcombine.high %v3506_v21, %v1326_v2 }
 0x3f5   : > { %v1658_v44 = vadd.f32 %v1657_v63, %v724_v41 }
 0x3f6   : > { %v2758_v46 = vpop.f32.mrf.mxu1 }
 0x3f7   : > { %v1806_v0 = vsel %vm1802_vm8, %v1658_v44, -inf }
 0x3f8   : > { %1807 = vmax.xlane.f32.xlu1 %v1806_v0  ;;  %v1701_v47 = vpop.f32.mrf.mxu1 }
 0x3f9   : > { %v1702_v48 = vadd.f32 %v1701_v47, %v723_v37 }
 0x3fa   : > { %v2763_v49 = vpop.f32.mrf.mxu1 }
 0x3fb   : > { %v1809_v50 = vsel %vm1802_vm8, %v1702_v48, -inf }
 0x3fc   : > { %1810 = vmax.xlane.f32.xlu0 %v1809_v50  ;;  %v1704_v51 = vpop.f32.mrf.mxu1 }
 0x3fd   : > { %v1705_v52 = vadd.f32 %v1704_v51, %v724_v41  ;;  %v1345_v51 = vrot.slane %v1337_v42, %v3527_v32 }
 0x3fe   : > { %v2764_v53 = vpop.f32.mrf.mxu1 }
 0x3ff   : > { %v1812_v58 = vsel %vm1802_vm8, %v1705_v52, -inf }
 0x400   : > { %1813 = vmax.xlane.f32.xlu0 %v1812_v58  ;;  %v1748_v59 = vpop.f32.mrf.mxu1 }
 0x401   : > { %v1749_v61 = vadd.f32 %v1748_v59, %v723_v37 }
 0x402   : > { %v2769_v62 = vpop.f32.mrf.mxu1 }
 0x403   : > { %v1815_v3 = vsel %vm1802_vm8, %v1749_v61, -inf  ;;  %v1406_v62 = vcombine.high %v3516_v22, %v3681_v10 }
 0x404   : > { %1816 = vmax.xlane.f32.xlu0 %v1815_v3  ;;  %v1751_v4 = vpop.f32.mrf.mxu1 }
 0x405   : > { %v1752_v5 = vadd.f32 %v1751_v4, %v724_v41 }
 0x406   : > { %v2770_v6 = vpop.f32.mrf.mxu1 }
 0x407   : > { %v1818_v7 = vsel %vm1802_vm8, %v1752_v5, -inf }
 0x408   : > { %1819 = vmax.xlane.f32.xlu1 %v1818_v7  ;;  %v1795_v30 = vpop.f32.mrf.mxu1 }
 0x409   : > { %v1796_v33 = vadd.f32 %v1795_v30, %v723_v37 }
 0x40a   : > { %v2775_v54 = vpop.f32.mrf.mxu1 }
 0x40b   : > { %v1821_v55 = vsel %vm1802_vm8, %v1796_v33, -inf }
 0x40c   : > { %1822 = vmax.xlane.f32.xlu0 %v1821_v55  ;;  %v1798_v34 = vpop.f32.mrf.mxu1 }
 0x40d   : > { %v1799_v35 = vadd.f32 %v1798_v34, %v724_v41 }
 0x40e   : > { %v2776_v56 = vpop.f32.mrf.mxu1 }
 0x40f   : > { %v1824_v57 = vsel %vm1802_vm8, %v1799_v35, -inf }
 0x410   : > { %1825 = vmax.xlane.f32.xlu1 %v1824_v57 }
 0x421   : > { %1333 = vrot.lane.b32.xlu1 %v3516_v22, %s3207_s16 }
 0x422   : > { %1331 = vrot.lane.b32.xlu0 %v3506_v21, %s3207_s16 }
 0x47d   : > { %v1805_v11 = vpop.xlane.xlu0 %1804 }
 0x47e   : > { %v1827_v12 = vsub.f32 %v1655_v40, %v1805_v11 }
 0x480   : > { %v1835_v14 = vmul.f32 1.442695, %v1827_v12 }
 0x481   : > { %v1808_v15 = vpop.xlane.xlu1 %1807 }
 0x482   : > { %2972 = vpow2.f32 %v1835_v14  ;;  %v1828_v17 = vsub.f32 %v1658_v44, %v1808_v15 }
 0x484   : > { %v1837_v18 = vmul.f32 1.442695, %v1828_v17 }
 0x485   : > { %v1811_v19 = vpop.xlane.xlu0 %1810 }
 0x486   : > { %2974 = vpow2.f32 %v1837_v18  ;;  %v1829_v16 = vsub.f32 %v1702_v48, %v1811_v19 }
 0x488   : > { %v1839_v60 = vmul.f32 1.442695, %v1829_v16 }
 0x489   : > { %v1814_v9 = vpop.xlane.xlu0 %1813 }
 0x48a   : > { %2976 = vpow2.f32 %v1839_v60  ;;  %v1830_v31 = vsub.f32 %v1705_v52, %v1814_v9  ;;  %v1352_v52 = vrot.slane %v1338_v43, %v3527_v32 }
 0x48c   : > { %v1841_v20 = vmul.f32 1.442695, %v1830_v31 }
 0x48d   : > { %v1817_v23 = vpop.xlane.xlu0 %1816 }
 0x48e   : > { %2978 = vpow2.f32 %v1841_v20  ;;  %v1831_v24 = vsub.f32 %v1749_v61, %v1817_v23  ;;  %v1405_v61 = vcombine.low %v3516_v22, %v3681_v10 }
 0x48f   : > { %v3683_v25 = vpop.eup %2972 }
 0x490   : > { %v1843_v26 = vmul.f32 1.442695, %v1831_v24  ;;  %v1851_v27 = vsel %vm1802_vm8, %v3683_v25, 0.0  ;;  %v1413_v56 = vrot.slane %v1405_v61, %v3527_v32 }
 0x491   : > { %v1820_v28 = vpop.xlane.xlu1 %1819  ;;  %1852 = vadd.xlane.f32.xlu0 %v1851_v27 }
 0x492   : > { %2980 = vpow2.f32 %v1843_v26  ;;  %v1832_v29 = vsub.f32 %v1752_v5, %v1820_v28 }
 0x493   : > { %v3687_v36 = vpop.eup %2974 }
 0x494   : > { %v1845_v37 = vmul.f32 1.442695, %v1832_v29  ;;  %v1854_v38 = vsel %vm1802_vm8, %v3687_v36, 0.0 }
 0x495   : > { %1855 = vadd.xlane.f32.xlu1 %v1854_v38  ;;  %v1823_v39 = vpop.xlane.xlu0 %1822 }
 0x496   : > { %2982 = vpow2.f32 %v1845_v37  ;;  %v1833_v40 = vsub.f32 %v1796_v33, %v1823_v39 }
 0x497   : > { %v3691_v41 = vpop.eup %2976 }
 0x498   : > { %v1847_v63 = vmul.f32 1.442695, %v1833_v40  ;;  %v1857_v44 = vsel %vm1802_vm8, %v3691_v41, 0.0 }
 0x499   : > { %v1826_v46 = vpop.xlane.xlu1 %1825  ;;  %1858 = vadd.xlane.f32.xlu0 %v1857_v44  ;;  %v1332_v0 = vpop.permute.xlu0 %1331 }
 0x49a   : > { %2984 = vpow2.f32 %v1847_v63  ;;  %v1834_v47 = vsub.f32 %v1799_v35, %v1826_v46  ;;  %v1353_v48 = vcombine.low %v1320_v8, %v1332_v0  ;;  %v1354_v49 = vcombine.high %v1320_v8, %v1332_v0 }
 0x49b   : > { %v3697_v50 = vpop.eup %2978 }
 0x49c   : > { %v1849_v53 = vmul.f32 1.442695, %v1834_v47  ;;  %v1361_v21 = vrot.slane %v1353_v48, %v3527_v32  ;;  %v1368_v58 = vrot.slane %v1354_v49, %v3527_v32  ;;  %v1860_v59 = vsel %vm1802_vm8, %v3697_v50, 0.0 }
 0x49d   : > { %v1334_v3 = vpop.permute.xlu1 %1333  ;;  %1861 = vadd.xlane.f32.xlu0 %v1860_v59 }
 0x49e   : > { %2986 = vpow2.f32 %v1849_v53  ;;  %v1369_v4 = vcombine.low %v1345_v51, %v1361_v21  ;;  %v1370_v5 = vcombine.high %v1345_v51, %v1361_v21  ;;  %v1385_v6 = vcombine.low %v1352_v52, %v1368_v58 }
 0x49f   : > { %v3709_v7 = vpop.eup %2980  ;;  %v1386_v30 = vcombine.high %v1352_v52, %v1368_v58  ;;  %v1421_v33 = vcombine.low %v3679_v1, %v1334_v3  ;;  %v1422_v54 = vcombine.high %v3679_v1, %v1334_v3  ;;  %v1420_v1 = vrot.slane %v1406_v62, %v3527_v32 }
 0x4a0   : > { %v1377_v55 = vrot.slane %v1369_v4, %v3534_v45  ;;  %v1384_v34 = vrot.slane %v1370_v5, %v3534_v45  ;;  %v1393_v35 = vrot.slane %v1385_v6, %v3534_v45  ;;  %v1863_v22 = vsel %vm1802_vm8, %v3709_v7, 0.0 }
 0x4a1   : > { %v1400_v57 = vrot.slane %v1386_v30, %v3534_v45  ;;  %v1429_v2 = vrot.slane %v1421_v33, %v3527_v32  ;;  %v1436_v8 = vrot.slane %v1422_v54, %v3527_v32  ;;  %1864 = vadd.xlane.f32.xlu0 %v1863_v22 }
 0x4a2   : > { %v1473_v10 = vcombine.low %v1377_v55, %v1384_v34  ;;  %v2667_v11 = vcombine.high %v1377_v55, %v1384_v34 }
 0x4a3   : > { %v3723_v12 = vpop.eup %2982  ;;  %v1489_v14 = vcombine.low %v1393_v35, %v1400_v57  ;;  %v2668_v15 = vcombine.high %v1393_v35, %v1400_v57  ;;  %v1437_v17 = vcombine.low %v1413_v56, %v1429_v2  ;;  %v1438_v18 = vcombine.high %v1413_v56, %v1429_v2 }
 0x4a4   : > { %v1480_v19 = vrot.slane %v1473_v10, %v3527_v32  ;;  %v1488_v16 = vrot.slane %v2667_v11, %v3527_v32  ;;  %v1453_v60 = vcombine.low %v1420_v1, %v1436_v8  ;;  %v1454_v9 = vcombine.high %v1420_v1, %v1436_v8 }
 0x4a5   : > { %v1496_v31 = vrot.slane %v1489_v14, %v3527_v32  ;;  %v1504_v20 = vrot.slane %v2668_v15, %v3527_v32  ;;  %v1445_v23 = vrot.slane %v1437_v17, %v3534_v45  ;;  %v1452_v24 = vrot.slane %v1438_v18, %v3534_v45  ;;  %v2958_v17 = vld [vmem:[#allocation8 + $0x28] sm:$0xff]   ;;  %v2959_v18 = vld [vmem:[#allocation8 + $0x20] sm:$0xff]  }
 0x4a6   : > { %v1461_v26 = vrot.slane %v1453_v60, %v3534_v45  ;;  %v1468_v27 = vrot.slane %v1454_v9, %v3534_v45  ;;  %v1866_v28 = vsel %vm1802_vm8, %v3723_v12, 0.0  ;;  %v1505_v39 = vcombine.low %v1480_v19, %v1488_v16 }
 0x4a7   : > { %v2985_v29 = vpop.eup %2984  ;;  %v1541_v37 = vcombine.low %v1445_v23, %v1452_v24  ;;  %v2669_v38 = vcombine.high %v1445_v23, %v1452_v24  ;;  %1867 = vadd.xlane.f32.xlu1 %v1866_v28  ;;  %v1521_v40 = vcombine.low %v1496_v31, %v1504_v20  ;;  %v1506_v48 = vcombine.high %v1480_v19, %v1488_v16 }
 0x4a8   : > { %v1557_v42 = vcombine.low %v1461_v26, %v1468_v27  ;;  %v2670_v43 = vcombine.high %v1461_v26, %v1468_v27  ;;  %v1869_v63 = vsel %vm1802_vm8, %v2985_v29, 0.0  ;;  %v1513_v51 = vrot.slane %v1505_v39, %v3534_v45 }
 0x4a9   : > { %v1548_v44 = vrot.slane %v1541_v37, %v3527_v32  ;;  %v1556_v46 = vrot.slane %v2669_v38, %v3527_v32  ;;  %1870 = vadd.xlane.f32.xlu0 %v1869_v63  ;;  %v1529_v52 = vrot.slane %v1521_v40, %v3534_v45  ;;  %v1522_v61 = vcombine.high %v1496_v31, %v1504_v20 }
 0x4aa   : > { %v1564_v0 = vrot.slane %v1557_v42, %v3527_v32  ;;  %v1572_v47 = vrot.slane %v2670_v43, %v3527_v32  ;;  %v1520_v33 = vrot.slane %v1506_v48, %v3534_v45  ;;  %v1875_v10 = vpack.c.bf16 %v3687_v36, %v3683_v25 }
 0x4ab   : > { %v2987_v49 = vpop.eup %2986  ;;  %v1573_v53 = vcombine.low %v1548_v44, %v1556_v46  ;;  %v1574_v21 = vcombine.high %v1548_v44, %v1556_v46  ;;  %v1537_v30 = vcombine.low %v1513_v51, %v1529_v52  ;;  %v1538_v55 = vcombine.high %v1513_v51, %v1529_v52 }
 0x4ac   : > { %v1872_v58 = vsel %vm1802_vm8, %v2987_v49, 0.0  ;;  %v1589_v59 = vcombine.low %v1564_v0, %v1572_v47  ;;  %v1590_v62 = vcombine.high %v1564_v0, %v1572_v47  ;;  %v1536_v35 = vrot.slane %v1522_v61, %v3534_v45 }
 0x4ad   : > { %1873 = vadd.xlane.f32.xlu1 %v1872_v58  ;;  %v1581_v3 = vrot.slane %v1573_v53, %v3534_v45  ;;  %v1588_v5 = vrot.slane %v1574_v21, %v3534_v45  ;;  %v1876_v11 = vpack.c.bf16 %v3697_v50, %v3691_v41  ;;  %v1877_v25 = vpack.c.bf16 %v3723_v12, %v3709_v7  ;;  %v2956_v41 = vld [vmem:[#allocation8 + $0x38] sm:$0xff]   ;;  %v2957_v50 = vld [vmem:[#allocation8 + $0x30] sm:$0xff]  }
 0x4ae   : > { %v1597_v4 = vrot.slane %v1589_v59, %v3534_v45  ;;  %v1604_v6 = vrot.slane %v1590_v62, %v3534_v45  ;;  %v1539_v8 = vcombine.low %v1520_v33, %v1536_v35  ;;  %v1540_v1 = vcombine.high %v1520_v33, %v1536_v35  ;;  %v2960_v7 = vld [vmem:[#allocation8 + $0x18] sm:$0xff]   ;;  %v2961_v12 = vld [vmem:[#allocation8 + $0x10] sm:$0xff]  }
 0x4af   : > { %v1878_v36 = vpack.c.bf16 %v2987_v49, %v2985_v29 }
 0x4b0   : > { %v1605_v54 = vcombine.low %v1581_v3, %v1597_v4  ;;  %v1606_v34 = vcombine.high %v1581_v3, %v1597_v4  ;;  %v1607_v57 = vcombine.low %v1588_v5, %v1604_v6  ;;  %v1608_v2 = vcombine.high %v1588_v5, %v1604_v6 }
 0x4b2   : > { %v1609_v22 = vpack.c.bf16 %v1605_v54, %v1537_v30  ;;  %v1610_v56 = vpack.c.bf16 %v1606_v34, %v1538_v55  ;;  %v1611_v14 = vpack.c.bf16 %v1607_v57, %v1539_v8  ;;  %v1612_v15 = vpack.c.bf16 %v1608_v2, %v1540_v1 }
 0x4b4   : > { %2778 = vmatpush3.bf16.msra.mxu0 %v1609_v22  ;;  %2784 = vmatpush3.bf16.msra.mxu1 %v1610_v56 }
 0x4b5   : > { %2789 = vmatprep.subr.bf16.mxu0 %v3202_v13  ;;  %2795 = vmatprep.subr.bf16.mxu1 %v3202_v13 }
 0x4b7   : > { %2780 = vmatmul.mubr.msk.bf16.vlgmr.msra.gmra.mxu0 %vm1802_vm8, %v1875_v10  ;;  %2786 = vmatmul.mubr.msk.bf16.vlgmr.msra.gmra.mxu1 %vm1802_vm8, %v1876_v11 }
 0x4b8   : > { %2790 = vmatpush3.bf16.msra.mxu0 %v1611_v14  ;;  %2796 = vmatpush3.bf16.msra.mxu1 %v1612_v15 }
 0x4b9   : > { %2791 = vmatprep.mubr.msk.bf16.mxu0 %vm3204_vm0, %v3202_v13  ;;  %2797 = vmatprep.mubr.msk.bf16.mxu1 %vm3204_vm0, %v3202_v13 }
 0x4ba   : > { %2801 = vmatprep.subr.bf16.mxu0 %v3202_v13 }
 0x4bf   : > { %2792 = vmatmul.mubr.msk.bf16.vlgmr.msra.gmra.mxu0 %vm1802_vm8, %v1877_v25  ;;  %2798 = vmatmul.mubr.msk.bf16.vlgmr.msra.gmra.mxu1 %vm1802_vm8, %v1878_v36 }
 0x4c0   : > { %2817 = vmatprep.mubr.msk.bf16.mxu0 %vm3204_vm0, %v3202_v13  ;;  %2802 = vmatpush3.bf16.msra.mxu0 %v2956_v41 }
 0x4c1   : > { %2803 = vmatprep.subr.bf16.mxu0 %v3202_v13 }
 0x4c4   : > { %2804 = vmatpush3.bf16.msra.mxu0 %v2957_v50 }
 0x4c5   : > { %2805 = vmatprep.subr.bf16.mxu0 %v3202_v13 }
 0x4c8   : > { %2806 = vmatpush3.bf16.msra.mxu0 %v2958_v17 }
 0x4c9   : > { %2807 = vmatprep.subr.bf16.mxu0 %v3202_v13 }
 0x4cc   : > { %2808 = vmatpush3.bf16.msra.mxu0 %v2959_v18 }
 0x4cd   : > { %2809 = vmatprep.subr.bf16.mxu0 %v3202_v13 }
 0x4d0   : > { %2810 = vmatpush3.bf16.msra.mxu0 %v2960_v7 }
 0x4d1   : > { %2811 = vmatprep.subr.bf16.mxu0 %v3202_v13 }
 0x4d4   : > { %2812 = vmatpush3.bf16.msra.mxu0 %v2961_v12 }
 0x4d5   : > { %2813 = vmatprep.subr.bf16.mxu0 %v3202_v13 }
 0x51a   : > { %v1853_v19 = vpop.xlane.xlu0 %1852 }
 0x51b   : > { %2988 = vrcp.f32 %v1853_v19 }
 0x51e   : > { %v1856_v31 = vpop.xlane.xlu1 %1855 }
 0x522   : > { %v1859_v16 = vpop.xlane.xlu0 %1858 }
 0x523   : > { %2990 = vrcp.f32 %v1859_v16 }
 0x526   : > { %v1862_v60 = vpop.xlane.xlu0 %1861 }
 0x528   : > { %v2989_v39 = vpop.eup %2988 }
 0x52a   : > { %v1865_v9 = vpop.xlane.xlu0 %1864 }
 0x52b   : > { %2992 = vrcp.f32 %v1865_v9 }
 0x530   : > { %v1868_v23 = vpop.xlane.xlu1 %1867  ;;  %v2991_v40 = vpop.eup %2990 }
 0x532   : > { %v1871_v20 = vpop.xlane.xlu0 %1870 }
 0x533   : > { %2994 = vrcp.f32 %v1871_v20 }
 0x534   : > { %2996 = vrcp.f32 %v1856_v31 }
 0x535   : > { %2998 = vrcp.f32 %v1862_v60 }
 0x536   : > { %v1874_v24 = vpop.xlane.xlu1 %1873  ;;  %3000 = vrcp.f32 %v1868_v23 }
 0x537   : > { %3002 = vrcp.f32 %v1874_v24 }
 0x538   : > { %v2993_v63 = vpop.eup %2992 }
 0x540   : > { %v2995_v44 = vpop.eup %2994 }
 0x541   : > { %v2997_v52 = vpop.eup %2996 }
 0x542   : > { %v2999_v58 = vpop.eup %2998 }
 0x543   : > { %v3001_v4 = vpop.eup %3000 }
 0x544   : > { %v3003_v30 = vpop.eup %3002 }
 0x577   : > { %v1916_v26 = vpop.f32.mrf.mxu0  ;;  %v1960_v27 = vpop.f32.mrf.mxu1 }
 0x578   : > { %v2063_v47 = vmul.f32 %v2989_v39, %v1916_v26  ;;  %v2065_v48 = vmul.f32 %v2991_v40, %v1960_v27 }
 0x579   : > { %v2781_v28 = vpop.f32.mrf.mxu0  ;;  %v2787_v29 = vpop.f32.mrf.mxu1 }
 0x57b   : > { %v1919_v37 = vpop.f32.mrf.mxu0  ;;  %v1963_v38 = vpop.f32.mrf.mxu1 }
 0x57c   : > { %v2064_v35 = vmul.f32 %v2997_v52, %v1919_v37  ;;  %v2066_v22 = vmul.f32 %v2999_v58, %v1963_v38  ;;  %v2962_v58 = vld [vmem:[#allocation8 + $0x8] sm:$0xff]  }
 0x57d   : > { %v2782_v42 = vpop.f32.mrf.mxu0  ;;  %v2788_v43 = vpop.f32.mrf.mxu1  ;;  %2814 = vmatpush3.bf16.msra.mxu0 %v2962_v58 }
 0x57e   : > { %2815 = vmatprep.subr.bf16.mxu0 %v3202_v13 }
 0x57f   : > { %v2004_v46 = vpop.f32.mrf.mxu0  ;;  %v2048_v0 = vpop.f32.mrf.mxu1 }
 0x580   : > { %v2067_v49 = vmul.f32 %v2993_v63, %v2004_v46  ;;  %v2069_v51 = vmul.f32 %v2995_v44, %v2048_v0 }
 0x581   : > { %v2793_v53 = vpop.f32.mrf.mxu0  ;;  %v2799_v21 = vpop.f32.mrf.mxu1 }
 0x582   : > { %v2071_v59 = vcombine.low %v2063_v47, %v2067_v49  ;;  %v2072_v61 = vcombine.high %v2063_v47, %v2067_v49  ;;  %v2087_v62 = vcombine.low %v2065_v48, %v2069_v51  ;;  %v2088_v3 = vcombine.high %v2065_v48, %v2069_v51 }
 0x583   : > { %v2007_v5 = vpop.f32.mrf.mxu0  ;;  %v2051_v6 = vpop.f32.mrf.mxu1 }
 0x584   : > { %v2079_v33 = vrot.slane %v2071_v59, %v3527_v32  ;;  %v2086_v54 = vrot.slane %v2072_v61, %v3527_v32  ;;  %v2095_v55 = vrot.slane %v2087_v62, %v3527_v32  ;;  %v2102_v34 = vrot.slane %v2088_v3, %v3527_v32 }
 0x585   : > { %v2068_v56 = vmul.f32 %v3001_v4, %v2007_v5  ;;  %v2070_v57 = vmul.f32 %v3003_v30, %v2051_v6  ;;  %v2794_v2 = vpop.f32.mrf.mxu0  ;;  %v2800_v8 = vpop.f32.mrf.mxu1 }
 0x586   : > { %v2103_v1 = vcombine.low %v2079_v33, %v2095_v55  ;;  %v2104_v10 = vcombine.high %v2079_v33, %v2095_v55  ;;  %v2119_v11 = vcombine.low %v2086_v54, %v2102_v34  ;;  %v2120_v14 = vcombine.high %v2086_v54, %v2102_v34 }
 0x587   : > { %v2139_v15 = vcombine.low %v2064_v35, %v2068_v56  ;;  %v2140_v25 = vcombine.high %v2064_v35, %v2068_v56  ;;  %v2155_v36 = vcombine.low %v2066_v22, %v2070_v57  ;;  %v2156_v41 = vcombine.high %v2066_v22, %v2070_v57  ;;  %v2963_v56 = vld [vmem:[#allocation8] sm:$0xff]  }
 0x588   : > { %v2111_v50 = vrot.slane %v2103_v1, %v3534_v45  ;;  %v2118_v17 = vrot.slane %v2104_v10, %v3534_v45  ;;  %v2127_v18 = vrot.slane %v2119_v11, %v3534_v45  ;;  %v2134_v7 = vrot.slane %v2120_v14, %v3534_v45  ;;  %2816 = vmatpush3.bf16.msra.mxu0 %v2963_v56 }
 0x589   : > { %v2147_v12 = vrot.slane %v2139_v15, %v3527_v32  ;;  %v2154_v19 = vrot.slane %v2140_v25, %v3527_v32  ;;  %v2163_v16 = vrot.slane %v2155_v36, %v3527_v32  ;;  %v2170_v60 = vrot.slane %v2156_v41, %v3527_v32 }
 0x58a   : > { %v2207_v9 = vcombine.low %v2111_v50, %v2118_v17  ;;  %v2679_v31 = vcombine.high %v2111_v50, %v2118_v17  ;;  %v2223_v20 = vcombine.low %v2127_v18, %v2134_v7  ;;  %v2680_v23 = vcombine.high %v2127_v18, %v2134_v7 }
 0x58b   : > { %v2171_v24 = vcombine.low %v2147_v12, %v2163_v16  ;;  %v2172_v26 = vcombine.high %v2147_v12, %v2163_v16  ;;  %v2187_v27 = vcombine.low %v2154_v19, %v2170_v60  ;;  %v2188_v28 = vcombine.high %v2154_v19, %v2170_v60 }
 0x58c   : > { %v2214_v29 = vrot.slane %v2207_v9, %v3527_v32  ;;  %v2222_v37 = vrot.slane %v2679_v31, %v3527_v32  ;;  %v2230_v38 = vrot.slane %v2223_v20, %v3527_v32  ;;  %v2238_v39 = vrot.slane %v2680_v23, %v3527_v32 }
 0x58d   : > { %v2179_v40 = vrot.slane %v2171_v24, %v3534_v45  ;;  %v2186_v42 = vrot.slane %v2172_v26, %v3534_v45  ;;  %v2195_v43 = vrot.slane %v2187_v27, %v3534_v45  ;;  %v2202_v63 = vrot.slane %v2188_v28, %v3534_v45  ;;  %v2683_v26 = vld [vmem:[%s3875_s7] ss:$0 sm:$0xff] }
 0x58e   : > { %v2240_v44 = vcombine.high %v2214_v29, %v2222_v37  ;;  %v2256_v46 = vcombine.high %v2230_v38, %v2238_v39  ;;  %v2239_v0 = vcombine.low %v2214_v29, %v2222_v37  ;;  %v2255_v47 = vcombine.low %v2230_v38, %v2238_v39  ;;  %v3004_v37 = vld [vmem:[%s3422_s26] sm:$0xff] }
 0x58f   : > { %v2275_v48 = vcombine.low %v2179_v40, %v2186_v42  ;;  %v2681_v49 = vcombine.high %v2179_v40, %v2186_v42  ;;  %v2291_v51 = vcombine.low %v2195_v43, %v2202_v63  ;;  %v2682_v52 = vcombine.high %v2195_v43, %v2202_v63  ;;  %v3005_v43 = vld [vmem:[%s3422_s26 + $0x8] sm:$0xff] }
 0x590   : > { %v2247_v53 = vrot.slane %v2239_v0, %v3534_v45  ;;  %v2263_v21 = vrot.slane %v2255_v47, %v3534_v45  ;;  %v2254_v4 = vrot.slane %v2240_v44, %v3534_v45  ;;  %v2270_v5 = vrot.slane %v2256_v46, %v3534_v45 }
 0x591   : > { %v2282_v59 = vrot.slane %v2275_v48, %v3527_v32  ;;  %v2290_v61 = vrot.slane %v2681_v49, %v3527_v32  ;;  %v2298_v62 = vrot.slane %v2291_v51, %v3527_v32  ;;  %v2306_v3 = vrot.slane %v2682_v52, %v3527_v32 }
 0x592   : > { %v2271_v6 = vcombine.low %v2247_v53, %v2263_v21  ;;  %v2273_v57 = vcombine.low %v2254_v4, %v2270_v5  ;;  %v2272_v8 = vcombine.high %v2247_v53, %v2263_v21  ;;  %v2274_v13 = vcombine.high %v2254_v4, %v2270_v5 }
 0x593   : > { %v2308_v30 = vcombine.high %v2282_v59, %v2290_v61  ;;  %v2324_v33 = vcombine.high %v2298_v62, %v2306_v3  ;;  %v2307_v54 = vcombine.low %v2282_v59, %v2290_v61  ;;  %v2323_v55 = vcombine.low %v2298_v62, %v2306_v3 }
 0x595   : > { %v2322_v34 = vrot.slane %v2308_v30, %v3534_v45  ;;  %v2338_v35 = vrot.slane %v2324_v33, %v3534_v45  ;;  %v2315_v22 = vrot.slane %v2307_v54, %v3534_v45  ;;  %v2331_v32 = vrot.slane %v2323_v55, %v3534_v45 }
 0x597   : > { %v2341_v2 = vcombine.low %v2322_v34, %v2338_v35  ;;  %v2340_v1 = vcombine.high %v2315_v22, %v2331_v32  ;;  %v2339_v10 = vcombine.low %v2315_v22, %v2331_v32  ;;  %v2342_v15 = vcombine.high %v2322_v34, %v2338_v35 }
 0x599   : > { %v2914_v11 = vpack.i.bf16 %v2341_v2, %v2273_v57  ;;  %v2909_v14 = vpack.i.bf16 %v2340_v1, %v2272_v8  ;;  %v2919_v25 = vpack.i.bf16 %v2342_v15, %v2274_v13 }
 0x59b   : > { %2915 = vrot.lane.b32.xlu1 %v2914_v11, %s3206_s10  ;;  %2910 = vrot.lane.b32.xlu0 %v2909_v14, %s3207_s16 }
 0x59f   : > { %2920 = vrot.lane.b32.xlu1 %v2919_v25, %s3205_s25 }
 0x60d   : > { %v2916_v36 = vpop.permute.xlu1 %2915  ;;  %v2911_v45 = vpop.permute.xlu0 %2910 }
 0x60e   : > { %v2913_v41 = vunpack.i.h.bf16 %v2911_v45  ;;  %v2912_v50 = vunpack.i.l.bf16 %v2911_v45  ;;  %v2918_v17 = vunpack.i.h.bf16 %v2916_v36  ;;  %v2917_v18 = vunpack.i.l.bf16 %v2916_v36 }
 0x610   : > { %v2368_v7 = vsel %vm1613_vm5, %v2339_v10, %v2913_v41  ;;  %v2367_v12 = vsel %vm1613_vm5, %v2271_v6, %v2912_v50 }
 0x611   : > { %v2921_v19 = vpop.permute.xlu1 %2920  ;;  %v2370_v9 = vsel %vm2369_vm9, %v2367_v12, %v2917_v18  ;;  %v2371_v31 = vsel %vm2369_vm9, %v2368_v7, %v2918_v17 }
 0x612   : > { %v2923_v16 = vunpack.i.h.bf16 %v2921_v19  ;;  %v2922_v60 = vunpack.i.l.bf16 %v2921_v19 }
 0x614   : > { %v2373_v20 = vsel %vm2372_vm10, %v2370_v9, %v2922_v60  ;;  %v2374_v23 = vsel %vm2372_vm10, %v2371_v31, %v2923_v16 }
 0x615   : > { %v2375_v24 = vpack.c.bf16 %v2374_v23, %v2373_v20 }
 0x617   : > { %2818 = vmatmul.mubr.bf16.vlgmr.msra.gmra.mxu0 %v2375_v24 }
 0x6d7   : > { %v2481_v27 = vpop.f32.mrf.mxu0 }
 0x6d8   : > { %v2482_v28 = vadd.f32 %v2683_v26, %v2481_v27 }
 0x6d9   : > { %v2819_v29 = vpop.f32.mrf.mxu0 }
 0x6da   : > { %v2488_v38 = vadd.f32 %v3004_v37, %v2482_v28 }
 0x6db   : > { %v2484_v39 = vpop.f32.mrf.mxu0 }
 0x6dc   : > { %2490 = vst [vmem:[%s386_s23] sm:$0xff] %v2488_v38  ;;  %v2485_v40 = vadd.f32 %v2683_v26, %v2484_v39 }
 0x6dd   : > { %v2820_v42 = vpop.f32.mrf.mxu0 }
 0x6de   : > { %v2489_v63 = vadd.f32 %v3005_v43, %v2485_v40 }
 0x6e0   : > { %2491 = vst [vmem:[%s386_s23 + $0x8] sm:$0xff] %v2489_v63 }
 0x6e1   : > { %3127 = shalt.err (!%p3124_p7)
}
 0x6e2   : > { %s3128_s26 = scalar_lea.hbm %s3824_s20, 256  ;;  %s3132_s19 = scalar_lea.hbm %s3876_s8, 512 }
 0x6e3   : > { %p3129_p10 = scmp.ne.s32.totalorder %s3824_s20, %s3128_s26  ;;  %p3133_p11 = scmp.lt.s32.totalorder %s3824_s20, %s3876_s8 }
 0x6e4   : > { %p3134_p2 = scmp.lt.s32.totalorder %s3132_s19, %s3128_s26 }
 0x6e5   : > { %p3130_p0 = pnand %p3129_p10, %p3910_p3 }
 0x6e6   : > { %p3135_p6 = por %p3134_p2, %p3133_p11 }
 0x6e7   : > { %p3131_p8 = pneg %p3130_p0 }
 0x6e9   : > { %p3136_p12 = pnand %p3135_p6, %p3131_p8 }
 0x6eb   : > { %3139 = shalt.err (!%p3136_p12)
}
 0x6ec   : > { %s3211_s16 = smov 128   ;;  %s3212_s4 = smov 8  }
 0x6ed   : > { %2833 = dma.vmem_to_hbm [thread:$0]  (%p3910_p3), %s3819_s12, 256, %s3824_s20, %s2493_s15, %s3211_s16, %s3211_s16, %s3212_s4  }
 0x6ee PF: > { %s3911_s6 = sld [smem:[#allocation17_spill]]  ;;  %s2521_s23 = sand.u32 1, %s3178_s27  }
 0x6ef   : > { %p3913_p13 = scmp.ge.s32.totalorder %s3190_s30, 2  ;;  %s2522_s24 = scalar_lea.sflag [#allocation4], %s2521_s23 }
 0x6f4   : > { %p3912_p9 = scmp.ne.s32.totalorder %s3911_s6, 0 }
 0x6f6   : > { %p2850_p5 = pnand %p3913_p13, %p3912_p9 }
 0x6f8   : > { %p2851_p1 = pneg %p2850_p5 }
 0x6fa   : > { %3173 = dma.done.wait (%p2851_p1), %s2522_s24, 256  }
 0x6fb   : > { %3175 = vsyncadd (%p2851_p1), %s2522_s24, 4294967040  ;;  %s3914_s30 = sld [smem:[#allocation18_spill]]  ;;  %s3917_s27 = smov %s3182_s28 }
 0x6fc   : > { %s3915_s0 = sld [smem:[#allocation16_spill]] }
 0x6fd   : > { %s3916_s29 = sld [smem:[#allocation19_spill]] }
 0x701   : > { %p25_p4 = scmp.ge.s32.totalorder %s3914_s30, 4  }
 0x702   : > { %s3918_s28 = smov %s3915_s0 }
 0x703   :  { %27 = sbr.rel (!%p25_p4) target bundleno = 12 (0xc), region = 118 }
 0x708   :  { %2527 = vsyncpa [#allocation3], 1 }
 0x709   :  { %2529 = vsyncpa [#allocation3 + $0x1], 1 }
 0x70a   :  { %2530 = vsyncpa [#allocation6], 1 }
 0x70b   :  { %2532 = vsyncpa [#allocation6 + $0x1], 1 }
 0x70c   :  { %2533 = vsyncpa [#allocation9], 1 }
 0x70d   :  { %2534 = vsyncpa [#allocation4], 1 }
 0x70e   :  { %2536 = vsyncpa [#allocation4 + $0x1], 1 }

</bundles_post_ra>
